<compile_context>
chip_gen: v7x
topology: tpu7x:2x2x1
jax: 0.10.0
libtpu: 0.0.40
codegen_flags: <defaults>
</compile_context>

<pallas_src>
import math

import jax
import jax.numpy as jnp
from jax.experimental import pallas as pl
from jax.experimental.pallas import tpu as pltpu

EPS = 1e-5


def _make_kernel(H, W, M_valid):
    """Builds the fused ResidualBlock kernel for images of spatial size H x W.

    Activations live as (C, Mp) with Mp = round_up(N*H*W, 128) on the lane
    axis; M_valid = N*H*W is the number of real (non-padding) columns.
    """

    def kernel(wpos_ref, hpos_ref, x_ref, w1_ref, w2_ref,
               g1_ref, b1_ref, g2_ref, b2_ref, alpha_ref, o_ref):
        # x_ref      : (C, Mp)      activations
        # w*_ref     : (9, C, C)    conv weights, tap index = kh*3 + kw
        # g*/b*_ref  : (C, 1)       BN gamma / beta
        # wpos/hpos  : (1, Mp) i32  per-position w / h coordinate (-1 on pad)
        # alpha_ref  : (1, 1) f32   PReLU slope (SMEM)
        # o_ref      : (C, Mp)      output
        C, Mp = x_ref.shape
        inv_m = 1.0 / M_valid

        # (1, Mp) boundary masks, hoisted once and reused by both convs;
        # jnp.where broadcasts them along sublanes at the use sites.
        wpos = wpos_ref[...]
        hpos = hpos_ref[...]
        w_first = wpos == 0
        w_last = wpos == (W - 1)
        h_first = hpos == 0
        h_last = hpos == (H - 1)
        alpha = alpha_ref[0, 0]

        def conv3x3(src, w_ref):
            """3x3 replicate-pad conv as 9 accumulated (C,C)x(C,Mp) matmuls.

            Taps are circular lane rotations (pltpu.roll) of `src`; the edge
            masks re-select `src` at image borders, which both implements
            replicate padding and kills the wrap / cross-image / lane-padding
            leakage of the circular roll (select, so no NaN propagation).
            """
            # horizontal taps: value at w-1 / w / w+1
            left = jnp.where(w_first, src, pltpu.roll(src, 1, axis=1))
            right = jnp.where(w_last, src, pltpu.roll(src, Mp - 1, axis=1))
            acc = None
            for kw, hval in enumerate((left, src, right)):
                # vertical taps: value at h-1 / h / h+1
                up = jnp.where(h_first, hval, pltpu.roll(hval, W, axis=1))
                down = jnp.where(h_last, hval, pltpu.roll(hval, Mp - W, axis=1))
                for kh, tap in enumerate((up, hval, down)):
                    part = jnp.dot(w_ref[kh * 3 + kw], tap,
                                   preferred_element_type=jnp.float32)
                    acc = part if acc is None else acc + part
            return acc

        # Lane-padding mask for BN sums (only needed when Mp != M_valid).
        valid = None if Mp == M_valid else (wpos >= 0).astype(jnp.float32)

        def batchnorm(t, g_ref, b_ref):
            """PyTorch train-mode BN (biased stats), two-pass variance."""
            tm = t if valid is None else t * valid
            mean = jnp.sum(tm, axis=1, keepdims=True) * inv_m
            cent = t - mean
            sq = cent * cent if valid is None else cent * cent * valid
            var = jnp.sum(sq, axis=1, keepdims=True) * inv_m
            scale = g_ref[...] * jax.lax.rsqrt(var + EPS)
            return cent * scale + b_ref[...]

        x = x_ref[...].astype(jnp.float32)

        r = conv3x3(x, w1_ref)
        r = batchnorm(r, g1_ref, b1_ref)
        r = jnp.where(r >= 0.0, r, alpha * r)          # fused PReLU
        r = conv3x3(r, w2_ref)
        r = batchnorm(r, g2_ref, b2_ref)
        o_ref[...] = (x + r).astype(o_ref.dtype)       # fused residual add

    return kernel


def residual_block(x_nchw, w1, w2, g1, b1, g2, b2, alpha):
    """x_nchw: (N, C, H, W) f32 (PyTorch layout).  w*: (C, C, 3, 3) OIHW.
    g*/b*: (C,) BN affine params.  alpha: scalar PReLU slope.
    Returns (N, C, H, W)."""
    N, C, H, W = x_nchw.shape
    M = N * H * W
    Mp = ((M + 127) // 128) * 128          # lane-dense: pad M to 128 multiple

    # Lane-dense layout: channels on sublanes, flattened (N, H, W) on lanes.
    x2 = jnp.transpose(x_nchw, (1, 0, 2, 3)).reshape(C, M).astype(jnp.float32)
    if Mp != M:
        x2 = jnp.pad(x2, ((0, 0), (0, Mp - M)))

    def pack_w(w):  # OIHW -> (9, C_out, C_in), tap index = kh*3 + kw
        return jnp.transpose(w, (2, 3, 0, 1)).reshape(9, C, C).astype(jnp.float32)

    w1p, w2p = pack_w(w1), pack_w(w2)
    g1v = g1.reshape(C, 1).astype(jnp.float32)
    b1v = b1.reshape(C, 1).astype(jnp.float32)
    g2v = g2.reshape(C, 1).astype(jnp.float32)
    b2v = b2.reshape(C, 1).astype(jnp.float32)
    av = jnp.asarray(alpha, jnp.float32).reshape(1, 1)

    # Per-position (h, w) coordinates for the replicate-padding boundary masks;
    # -1 marks lane-padding columns (they are excluded from BN statistics).
    m_idx = jnp.arange(Mp, dtype=jnp.int32)
    in_img = m_idx < M
    wpos = jnp.where(in_img, m_idx % W, -1).reshape(1, Mp)
    hpos = jnp.where(in_img, (m_idx // W) % H, -1).reshape(1, Mp)

    vmem = pl.BlockSpec(memory_space=pltpu.MemorySpace.VMEM)
    smem = pl.BlockSpec(memory_space=pltpu.MemorySpace.SMEM)

    cost = pl.CostEstimate(
        flops=2 * (2 * M * C * 9 * C) + 16 * M * C,
        transcendentals=2 * C,
        bytes_accessed=4 * (2 * Mp * C + 2 * 9 * C * C + 4 * C + 2 * Mp + 1),
    )

    out2 = pl.pallas_call(
        _make_kernel(H, W, M),
        out_shape=jax.ShapeDtypeStruct((C, Mp), jnp.float32),
        in_specs=[vmem] * 9 + [smem],
        out_specs=vmem,
        compiler_params=pltpu.CompilerParams(
            vmem_limit_bytes=48 * 1024 * 1024),
        cost_estimate=cost,
    )(wpos, hpos, x2, w1p, w2p, g1v, b1v, g2v, b2v, av)

    out = jnp.transpose(out2[:, :M].reshape(C, N, H, W), (1, 0, 2, 3))
    return out.astype(x_nchw.dtype)


# ---------------------------------------------------------------------------
# Pure-JAX reference (used only to sanity-check the kernel).
# ---------------------------------------------------------------------------
def _reference(x, w1, w2, g1, b1, g2, b2, alpha):
    def conv(t, w):
        tp = jnp.pad(t, ((0, 0), (0, 0), (1, 1), (1, 1)), mode="edge")
        return jax.lax.conv_general_dilated(
            tp, w, window_strides=(1, 1), padding="VALID",
            dimension_numbers=("NCHW", "OIHW", "NCHW"))

    def bn(t, g, b):
        mean = t.mean(axis=(0, 2, 3), keepdims=True)
        var = ((t - mean) ** 2).mean(axis=(0, 2, 3), keepdims=True)
        return (t - mean) / jnp.sqrt(var + EPS) * g.reshape(1, -1, 1, 1) \
            + b.reshape(1, -1, 1, 1)

    r = conv(x, w1)
    r = bn(r, g1, b1)
    r = jnp.where(r >= 0.0, r, alpha * r)
    r = conv(r, w2)
    r = bn(r, g2, b2)
    return x + r


if __name__ == "__main__":
    N, C, H, W = 2, 4, 16, 16

    key = jax.random.PRNGKey(0)
    k_w1, k_w2, k_x = jax.random.split(key, 3)

    # Deterministic parameter init (matches nn.Conv2d / nn.BatchNorm2d / nn.PReLU defaults)
    fan_in = C * 3 * 3
    bound = 1.0 / math.sqrt(fan_in)
    w1 = jax.random.uniform(k_w1, (C, C, 3, 3), jnp.float32, -bound, bound)
    w2 = jax.random.uniform(k_w2, (C, C, 3, 3), jnp.float32, -bound, bound)
    g1 = jnp.ones((C,), jnp.float32)
    b1 = jnp.zeros((C,), jnp.float32)
    g2 = jnp.ones((C,), jnp.float32)
    b2 = jnp.zeros((C,), jnp.float32)
    alpha = jnp.float32(0.25)  # nn.PReLU() default

    x = jax.random.normal(k_x, (N, C, H, W), jnp.float32)

    out = jax.block_until_ready(residual_block(x, w1, w2, g1, b1, g2, b2, alpha))

    ref = _reference(x, w1, w2, g1, b1, g2, b2, alpha)
    assert out.shape == (N, C, H, W)
    assert jnp.allclose(out, ref, atol=2e-4, rtol=2e-4), \
        f"max abs diff {jnp.max(jnp.abs(out - ref))}"

    print("KERNEL_OK")
</pallas_src>

<mosaic_0001>
module attributes {stable_mosaic.version = 11 : i64} {
  func.func @kernel(%arg0: memref<1x512xi32, #tpu.memory_space<vmem>>, %arg1: memref<1x512xi32, #tpu.memory_space<vmem>>, %arg2: memref<4x512xf32, #tpu.memory_space<vmem>>, %arg3: memref<9x4x4xf32, #tpu.memory_space<vmem>>, %arg4: memref<9x4x4xf32, #tpu.memory_space<vmem>>, %arg5: memref<4x1xf32, #tpu.memory_space<vmem>>, %arg6: memref<4x1xf32, #tpu.memory_space<vmem>>, %arg7: memref<4x1xf32, #tpu.memory_space<vmem>>, %arg8: memref<4x1xf32, #tpu.memory_space<vmem>>, %arg9: memref<1x1xf32, #tpu.memory_space<smem>>, %arg10: memref<4x512xf32, #tpu.memory_space<vmem>>) attributes {dimension_semantics = [], scalar_prefetch = 0 : i64, scratch_operands = 0 : i64, tpu.core_type = #tpu.core_type<tc>} {
    %c0 = arith.constant 0 : index
    %c0_0 = arith.constant 0 : index
    %0 = vector.load %arg0[%c0, %c0_0] : memref<1x512xi32, #tpu.memory_space<vmem>>, vector<1x512xi32>
    %c0_1 = arith.constant 0 : index
    %c0_2 = arith.constant 0 : index
    %1 = vector.load %arg1[%c0_1, %c0_2] : memref<1x512xi32, #tpu.memory_space<vmem>>, vector<1x512xi32>
    %c0_i32 = arith.constant 0 : i32
    %2 = vector.broadcast %c0_i32 : i32 to vector<1x512xi32>
    %3 = arith.cmpi eq, %0, %2 : vector<1x512xi32>
    %c15_i32 = arith.constant 15 : i32
    %4 = vector.broadcast %c15_i32 : i32 to vector<1x512xi32>
    %5 = arith.cmpi eq, %0, %4 : vector<1x512xi32>
    %c0_i32_3 = arith.constant 0 : i32
    %6 = vector.broadcast %c0_i32_3 : i32 to vector<1x512xi32>
    %7 = arith.cmpi eq, %1, %6 : vector<1x512xi32>
    %c15_i32_4 = arith.constant 15 : i32
    %8 = vector.broadcast %c15_i32_4 : i32 to vector<1x512xi32>
    %9 = arith.cmpi eq, %1, %8 : vector<1x512xi32>
    %c0_5 = arith.constant 0 : index
    %c0_6 = arith.constant 0 : index
    %10 = memref.load %arg9[%c0_5, %c0_6] : memref<1x1xf32, #tpu.memory_space<smem>>
    %c0_7 = arith.constant 0 : index
    %c0_8 = arith.constant 0 : index
    %11 = vector.load %arg2[%c0_7, %c0_8] : memref<4x512xf32, #tpu.memory_space<vmem>>, vector<4x512xf32>
    %c1_i32 = arith.constant 1 : i32
    %12 = tpu.dynamic_rotate %11 by %c1_i32 dim 1 : vector<4x512xf32>, i32 -> vector<4x512xf32>
    %13 = vector.shape_cast %3 : vector<1x512xi1> to vector<1x512xi1>
    %14 = vector.broadcast %13 : vector<1x512xi1> to vector<4x512xi1>
    %15 = arith.select %14, %11, %12 : vector<4x512xi1>, vector<4x512xf32>
    %c511_i32 = arith.constant 511 : i32
    %16 = tpu.dynamic_rotate %11 by %c511_i32 dim 1 : vector<4x512xf32>, i32 -> vector<4x512xf32>
    %17 = vector.shape_cast %5 : vector<1x512xi1> to vector<1x512xi1>
    %18 = vector.broadcast %17 : vector<1x512xi1> to vector<4x512xi1>
    %19 = arith.select %18, %11, %16 : vector<4x512xi1>, vector<4x512xf32>
    %c16_i32 = arith.constant 16 : i32
    %20 = tpu.dynamic_rotate %15 by %c16_i32 dim 1 : vector<4x512xf32>, i32 -> vector<4x512xf32>
    %21 = vector.shape_cast %7 : vector<1x512xi1> to vector<1x512xi1>
    %22 = vector.broadcast %21 : vector<1x512xi1> to vector<4x512xi1>
    %23 = arith.select %22, %15, %20 : vector<4x512xi1>, vector<4x512xf32>
    %c496_i32 = arith.constant 496 : i32
    %24 = tpu.dynamic_rotate %15 by %c496_i32 dim 1 : vector<4x512xf32>, i32 -> vector<4x512xf32>
    %25 = vector.shape_cast %9 : vector<1x512xi1> to vector<1x512xi1>
    %26 = vector.broadcast %25 : vector<1x512xi1> to vector<4x512xi1>
    %27 = arith.select %26, %15, %24 : vector<4x512xi1>, vector<4x512xf32>
    %c0_9 = arith.constant 0 : index
    %c0_10 = arith.constant 0 : index
    %c0_11 = arith.constant 0 : index
    %28 = vector.load %arg3[%c0_9, %c0_10, %c0_11] : memref<9x4x4xf32, #tpu.memory_space<vmem>>, vector<1x4x4xf32>
    %29 = vector.shape_cast %28 : vector<1x4x4xf32> to vector<4x4xf32>
    %cst = arith.constant dense<0.000000e+00> : vector<4x512xf32>
    %30 = tpu.matmul %29, %23, %cst {dimension_numbers = #tpu.dot_dimension_numbers<[1], [0], [0], [1], [0, 0, 1, 1], [], []>} : vector<4x4xf32>, vector<4x512xf32>, vector<4x512xf32> -> vector<4x512xf32>
    %c3 = arith.constant 3 : index
    %c0_12 = arith.constant 0 : index
    %c0_13 = arith.constant 0 : index
    %31 = vector.load %arg3[%c3, %c0_12, %c0_13] : memref<9x4x4xf32, #tpu.memory_space<vmem>>, vector<1x4x4xf32>
    %32 = vector.shape_cast %31 : vector<1x4x4xf32> to vector<4x4xf32>
    %cst_14 = arith.constant dense<0.000000e+00> : vector<4x512xf32>
    %33 = tpu.matmul %32, %15, %cst_14 {dimension_numbers = #tpu.dot_dimension_numbers<[1], [0], [0], [1], [0, 0, 1, 1], [], []>} : vector<4x4xf32>, vector<4x512xf32>, vector<4x512xf32> -> vector<4x512xf32>
    %34 = arith.addf %30, %33 : vector<4x512xf32>
    %c6 = arith.constant 6 : index
    %c0_15 = arith.constant 0 : index
    %c0_16 = arith.constant 0 : index
    %35 = vector.load %arg3[%c6, %c0_15, %c0_16] : memref<9x4x4xf32, #tpu.memory_space<vmem>>, vector<1x4x4xf32>
    %36 = vector.shape_cast %35 : vector<1x4x4xf32> to vector<4x4xf32>
    %cst_17 = arith.constant dense<0.000000e+00> : vector<4x512xf32>
    %37 = tpu.matmul %36, %27, %cst_17 {dimension_numbers = #tpu.dot_dimension_numbers<[1], [0], [0], [1], [0, 0, 1, 1], [], []>} : vector<4x4xf32>, vector<4x512xf32>, vector<4x512xf32> -> vector<4x512xf32>
    %38 = arith.addf %34, %37 : vector<4x512xf32>
    %c16_i32_18 = arith.constant 16 : i32
    %39 = tpu.dynamic_rotate %11 by %c16_i32_18 dim 1 : vector<4x512xf32>, i32 -> vector<4x512xf32>
    %40 = vector.shape_cast %7 : vector<1x512xi1> to vector<1x512xi1>
    %41 = vector.broadcast %40 : vector<1x512xi1> to vector<4x512xi1>
    %42 = arith.select %41, %11, %39 : vector<4x512xi1>, vector<4x512xf32>
    %c496_i32_19 = arith.constant 496 : i32
    %43 = tpu.dynamic_rotate %11 by %c496_i32_19 dim 1 : vector<4x512xf32>, i32 -> vector<4x512xf32>
    %44 = vector.shape_cast %9 : vector<1x512xi1> to vector<1x512xi1>
    %45 = vector.broadcast %44 : vector<1x512xi1> to vector<4x512xi1>
    %46 = arith.select %45, %11, %43 : vector<4x512xi1>, vector<4x512xf32>
    %c1 = arith.constant 1 : index
    %c0_20 = arith.constant 0 : index
    %c0_21 = arith.constant 0 : index
    %47 = vector.load %arg3[%c1, %c0_20, %c0_21] : memref<9x4x4xf32, #tpu.memory_space<vmem>>, vector<1x4x4xf32>
    %48 = vector.shape_cast %47 : vector<1x4x4xf32> to vector<4x4xf32>
    %cst_22 = arith.constant dense<0.000000e+00> : vector<4x512xf32>
    %49 = tpu.matmul %48, %42, %cst_22 {dimension_numbers = #tpu.dot_dimension_numbers<[1], [0], [0], [1], [0, 0, 1, 1], [], []>} : vector<4x4xf32>, vector<4x512xf32>, vector<4x512xf32> -> vector<4x512xf32>
    %50 = arith.addf %38, %49 : vector<4x512xf32>
    %c4 = arith.constant 4 : index
    %c0_23 = arith.constant 0 : index
    %c0_24 = arith.constant 0 : index
    %51 = vector.load %arg3[%c4, %c0_23, %c0_24] : memref<9x4x4xf32, #tpu.memory_space<vmem>>, vector<1x4x4xf32>
    %52 = vector.shape_cast %51 : vector<1x4x4xf32> to vector<4x4xf32>
    %cst_25 = arith.constant dense<0.000000e+00> : vector<4x512xf32>
    %53 = tpu.matmul %52, %11, %cst_25 {dimension_numbers = #tpu.dot_dimension_numbers<[1], [0], [0], [1], [0, 0, 1, 1], [], []>} : vector<4x4xf32>, vector<4x512xf32>, vector<4x512xf32> -> vector<4x512xf32>
    %54 = arith.addf %50, %53 : vector<4x512xf32>
    %c7 = arith.constant 7 : index
    %c0_26 = arith.constant 0 : index
    %c0_27 = arith.constant 0 : index
    %55 = vector.load %arg3[%c7, %c0_26, %c0_27] : memref<9x4x4xf32, #tpu.memory_space<vmem>>, vector<1x4x4xf32>
    %56 = vector.shape_cast %55 : vector<1x4x4xf32> to vector<4x4xf32>
    %cst_28 = arith.constant dense<0.000000e+00> : vector<4x512xf32>
    %57 = tpu.matmul %56, %46, %cst_28 {dimension_numbers = #tpu.dot_dimension_numbers<[1], [0], [0], [1], [0, 0, 1, 1], [], []>} : vector<4x4xf32>, vector<4x512xf32>, vector<4x512xf32> -> vector<4x512xf32>
    %58 = arith.addf %54, %57 : vector<4x512xf32>
    %c16_i32_29 = arith.constant 16 : i32
    %59 = tpu.dynamic_rotate %19 by %c16_i32_29 dim 1 : vector<4x512xf32>, i32 -> vector<4x512xf32>
    %60 = vector.shape_cast %7 : vector<1x512xi1> to vector<1x512xi1>
    %61 = vector.broadcast %60 : vector<1x512xi1> to vector<4x512xi1>
    %62 = arith.select %61, %19, %59 : vector<4x512xi1>, vector<4x512xf32>
    %c496_i32_30 = arith.constant 496 : i32
    %63 = tpu.dynamic_rotate %19 by %c496_i32_30 dim 1 : vector<4x512xf32>, i32 -> vector<4x512xf32>
    %64 = vector.shape_cast %9 : vector<1x512xi1> to vector<1x512xi1>
    %65 = vector.broadcast %64 : vector<1x512xi1> to vector<4x512xi1>
    %66 = arith.select %65, %19, %63 : vector<4x512xi1>, vector<4x512xf32>
    %c2 = arith.constant 2 : index
    %c0_31 = arith.constant 0 : index
    %c0_32 = arith.constant 0 : index
    %67 = vector.load %arg3[%c2, %c0_31, %c0_32] : memref<9x4x4xf32, #tpu.memory_space<vmem>>, vector<1x4x4xf32>
    %68 = vector.shape_cast %67 : vector<1x4x4xf32> to vector<4x4xf32>
    %cst_33 = arith.constant dense<0.000000e+00> : vector<4x512xf32>
    %69 = tpu.matmul %68, %62, %cst_33 {dimension_numbers = #tpu.dot_dimension_numbers<[1], [0], [0], [1], [0, 0, 1, 1], [], []>} : vector<4x4xf32>, vector<4x512xf32>, vector<4x512xf32> -> vector<4x512xf32>
    %70 = arith.addf %58, %69 : vector<4x512xf32>
    %c5 = arith.constant 5 : index
    %c0_34 = arith.constant 0 : index
    %c0_35 = arith.constant 0 : index
    %71 = vector.load %arg3[%c5, %c0_34, %c0_35] : memref<9x4x4xf32, #tpu.memory_space<vmem>>, vector<1x4x4xf32>
    %72 = vector.shape_cast %71 : vector<1x4x4xf32> to vector<4x4xf32>
    %cst_36 = arith.constant dense<0.000000e+00> : vector<4x512xf32>
    %73 = tpu.matmul %72, %19, %cst_36 {dimension_numbers = #tpu.dot_dimension_numbers<[1], [0], [0], [1], [0, 0, 1, 1], [], []>} : vector<4x4xf32>, vector<4x512xf32>, vector<4x512xf32> -> vector<4x512xf32>
    %74 = arith.addf %70, %73 : vector<4x512xf32>
    %c8 = arith.constant 8 : index
    %c0_37 = arith.constant 0 : index
    %c0_38 = arith.constant 0 : index
    %75 = vector.load %arg3[%c8, %c0_37, %c0_38] : memref<9x4x4xf32, #tpu.memory_space<vmem>>, vector<1x4x4xf32>
    %76 = vector.shape_cast %75 : vector<1x4x4xf32> to vector<4x4xf32>
    %cst_39 = arith.constant dense<0.000000e+00> : vector<4x512xf32>
    %77 = tpu.matmul %76, %66, %cst_39 {dimension_numbers = #tpu.dot_dimension_numbers<[1], [0], [0], [1], [0, 0, 1, 1], [], []>} : vector<4x4xf32>, vector<4x512xf32>, vector<4x512xf32> -> vector<4x512xf32>
    %78 = arith.addf %74, %77 : vector<4x512xf32>
    %cst_40 = arith.constant dense<0.000000e+00> : vector<4xf32>
    %79 = vector.multi_reduction <add>, %78, %cst_40 [1] : vector<4x512xf32> to vector<4xf32>
    %80 = vector.shape_cast %79 : vector<4xf32> to vector<4x1xf32>
    %cst_41 = arith.constant 0.001953125 : f32
    %81 = vector.broadcast %cst_41 : f32 to vector<4x1xf32>
    %82 = arith.mulf %80, %81 : vector<4x1xf32>
    %83 = vector.broadcast %82 : vector<4x1xf32> to vector<4x512xf32>
    %84 = arith.subf %78, %83 : vector<4x512xf32>
    %85 = arith.mulf %84, %84 : vector<4x512xf32>
    %cst_42 = arith.constant dense<0.000000e+00> : vector<4xf32>
    %86 = vector.multi_reduction <add>, %85, %cst_42 [1] : vector<4x512xf32> to vector<4xf32>
    %87 = vector.shape_cast %86 : vector<4xf32> to vector<4x1xf32>
    %cst_43 = arith.constant 0.001953125 : f32
    %88 = vector.broadcast %cst_43 : f32 to vector<4x1xf32>
    %89 = arith.mulf %87, %88 : vector<4x1xf32>
    %c0_44 = arith.constant 0 : index
    %c0_45 = arith.constant 0 : index
    %90 = vector.load %arg5[%c0_44, %c0_45] : memref<4x1xf32, #tpu.memory_space<vmem>>, vector<4x1xf32>
    %cst_46 = arith.constant 9.99999974E-6 : f32
    %91 = vector.broadcast %cst_46 : f32 to vector<4x1xf32>
    %92 = arith.addf %89, %91 : vector<4x1xf32>
    %93 = math.rsqrt %92 : vector<4x1xf32>
    %94 = arith.mulf %90, %93 : vector<4x1xf32>
    %95 = vector.broadcast %94 : vector<4x1xf32> to vector<4x512xf32>
    %96 = arith.mulf %84, %95 : vector<4x512xf32>
    %c0_47 = arith.constant 0 : index
    %c0_48 = arith.constant 0 : index
    %97 = vector.load %arg6[%c0_47, %c0_48] : memref<4x1xf32, #tpu.memory_space<vmem>>, vector<4x1xf32>
    %98 = vector.broadcast %97 : vector<4x1xf32> to vector<4x512xf32>
    %99 = arith.addf %96, %98 : vector<4x512xf32>
    %cst_49 = arith.constant 0.000000e+00 : f32
    %100 = vector.broadcast %cst_49 : f32 to vector<4x512xf32>
    %101 = arith.cmpf oge, %99, %100 : vector<4x512xf32>
    %102 = vector.broadcast %10 : f32 to vector<4x512xf32>
    %103 = arith.mulf %102, %99 : vector<4x512xf32>
    %104 = arith.select %101, %99, %103 : vector<4x512xi1>, vector<4x512xf32>
    %c1_i32_50 = arith.constant 1 : i32
    %105 = tpu.dynamic_rotate %104 by %c1_i32_50 dim 1 : vector<4x512xf32>, i32 -> vector<4x512xf32>
    %106 = vector.shape_cast %3 : vector<1x512xi1> to vector<1x512xi1>
    %107 = vector.broadcast %106 : vector<1x512xi1> to vector<4x512xi1>
    %108 = arith.select %107, %104, %105 : vector<4x512xi1>, vector<4x512xf32>
    %c511_i32_51 = arith.constant 511 : i32
    %109 = tpu.dynamic_rotate %104 by %c511_i32_51 dim 1 : vector<4x512xf32>, i32 -> vector<4x512xf32>
    %110 = vector.shape_cast %5 : vector<1x512xi1> to vector<1x512xi1>
    %111 = vector.broadcast %110 : vector<1x512xi1> to vector<4x512xi1>
    %112 = arith.select %111, %104, %109 : vector<4x512xi1>, vector<4x512xf32>
    %c16_i32_52 = arith.constant 16 : i32
    %113 = tpu.dynamic_rotate %108 by %c16_i32_52 dim 1 : vector<4x512xf32>, i32 -> vector<4x512xf32>
    %114 = vector.shape_cast %7 : vector<1x512xi1> to vector<1x512xi1>
    %115 = vector.broadcast %114 : vector<1x512xi1> to vector<4x512xi1>
    %116 = arith.select %115, %108, %113 : vector<4x512xi1>, vector<4x512xf32>
    %c496_i32_53 = arith.constant 496 : i32
    %117 = tpu.dynamic_rotate %108 by %c496_i32_53 dim 1 : vector<4x512xf32>, i32 -> vector<4x512xf32>
    %118 = vector.shape_cast %9 : vector<1x512xi1> to vector<1x512xi1>
    %119 = vector.broadcast %118 : vector<1x512xi1> to vector<4x512xi1>
    %120 = arith.select %119, %108, %117 : vector<4x512xi1>, vector<4x512xf32>
    %c0_54 = arith.constant 0 : index
    %c0_55 = arith.constant 0 : index
    %c0_56 = arith.constant 0 : index
    %121 = vector.load %arg4[%c0_54, %c0_55, %c0_56] : memref<9x4x4xf32, #tpu.memory_space<vmem>>, vector<1x4x4xf32>
    %122 = vector.shape_cast %121 : vector<1x4x4xf32> to vector<4x4xf32>
    %cst_57 = arith.constant dense<0.000000e+00> : vector<4x512xf32>
    %123 = tpu.matmul %122, %116, %cst_57 {dimension_numbers = #tpu.dot_dimension_numbers<[1], [0], [0], [1], [0, 0, 1, 1], [], []>} : vector<4x4xf32>, vector<4x512xf32>, vector<4x512xf32> -> vector<4x512xf32>
    %c3_58 = arith.constant 3 : index
    %c0_59 = arith.constant 0 : index
    %c0_60 = arith.constant 0 : index
    %124 = vector.load %arg4[%c3_58, %c0_59, %c0_60] : memref<9x4x4xf32, #tpu.memory_space<vmem>>, vector<1x4x4xf32>
    %125 = vector.shape_cast %124 : vector<1x4x4xf32> to vector<4x4xf32>
    %cst_61 = arith.constant dense<0.000000e+00> : vector<4x512xf32>
    %126 = tpu.matmul %125, %108, %cst_61 {dimension_numbers = #tpu.dot_dimension_numbers<[1], [0], [0], [1], [0, 0, 1, 1], [], []>} : vector<4x4xf32>, vector<4x512xf32>, vector<4x512xf32> -> vector<4x512xf32>
    %127 = arith.addf %123, %126 : vector<4x512xf32>
    %c6_62 = arith.constant 6 : index
    %c0_63 = arith.constant 0 : index
    %c0_64 = arith.constant 0 : index
    %128 = vector.load %arg4[%c6_62, %c0_63, %c0_64] : memref<9x4x4xf32, #tpu.memory_space<vmem>>, vector<1x4x4xf32>
    %129 = vector.shape_cast %128 : vector<1x4x4xf32> to vector<4x4xf32>
    %cst_65 = arith.constant dense<0.000000e+00> : vector<4x512xf32>
    %130 = tpu.matmul %129, %120, %cst_65 {dimension_numbers = #tpu.dot_dimension_numbers<[1], [0], [0], [1], [0, 0, 1, 1], [], []>} : vector<4x4xf32>, vector<4x512xf32>, vector<4x512xf32> -> vector<4x512xf32>
    %131 = arith.addf %127, %130 : vector<4x512xf32>
    %c16_i32_66 = arith.constant 16 : i32
    %132 = tpu.dynamic_rotate %104 by %c16_i32_66 dim 1 : vector<4x512xf32>, i32 -> vector<4x512xf32>
    %133 = vector.shape_cast %7 : vector<1x512xi1> to vector<1x512xi1>
    %134 = vector.broadcast %133 : vector<1x512xi1> to vector<4x512xi1>
    %135 = arith.select %134, %104, %132 : vector<4x512xi1>, vector<4x512xf32>
    %c496_i32_67 = arith.constant 496 : i32
    %136 = tpu.dynamic_rotate %104 by %c496_i32_67 dim 1 : vector<4x512xf32>, i32 -> vector<4x512xf32>
    %137 = vector.shape_cast %9 : vector<1x512xi1> to vector<1x512xi1>
    %138 = vector.broadcast %137 : vector<1x512xi1> to vector<4x512xi1>
    %139 = arith.select %138, %104, %136 : vector<4x512xi1>, vector<4x512xf32>
    %c1_68 = arith.constant 1 : index
    %c0_69 = arith.constant 0 : index
    %c0_70 = arith.constant 0 : index
    %140 = vector.load %arg4[%c1_68, %c0_69, %c0_70] : memref<9x4x4xf32, #tpu.memory_space<vmem>>, vector<1x4x4xf32>
    %141 = vector.shape_cast %140 : vector<1x4x4xf32> to vector<4x4xf32>
    %cst_71 = arith.constant dense<0.000000e+00> : vector<4x512xf32>
    %142 = tpu.matmul %141, %135, %cst_71 {dimension_numbers = #tpu.dot_dimension_numbers<[1], [0], [0], [1], [0, 0, 1, 1], [], []>} : vector<4x4xf32>, vector<4x512xf32>, vector<4x512xf32> -> vector<4x512xf32>
    %143 = arith.addf %131, %142 : vector<4x512xf32>
    %c4_72 = arith.constant 4 : index
    %c0_73 = arith.constant 0 : index
    %c0_74 = arith.constant 0 : index
    %144 = vector.load %arg4[%c4_72, %c0_73, %c0_74] : memref<9x4x4xf32, #tpu.memory_space<vmem>>, vector<1x4x4xf32>
    %145 = vector.shape_cast %144 : vector<1x4x4xf32> to vector<4x4xf32>
    %cst_75 = arith.constant dense<0.000000e+00> : vector<4x512xf32>
    %146 = tpu.matmul %145, %104, %cst_75 {dimension_numbers = #tpu.dot_dimension_numbers<[1], [0], [0], [1], [0, 0, 1, 1], [], []>} : vector<4x4xf32>, vector<4x512xf32>, vector<4x512xf32> -> vector<4x512xf32>
    %147 = arith.addf %143, %146 : vector<4x512xf32>
    %c7_76 = arith.constant 7 : index
    %c0_77 = arith.constant 0 : index
    %c0_78 = arith.constant 0 : index
    %148 = vector.load %arg4[%c7_76, %c0_77, %c0_78] : memref<9x4x4xf32, #tpu.memory_space<vmem>>, vector<1x4x4xf32>
    %149 = vector.shape_cast %148 : vector<1x4x4xf32> to vector<4x4xf32>
    %cst_79 = arith.constant dense<0.000000e+00> : vector<4x512xf32>
    %150 = tpu.matmul %149, %139, %cst_79 {dimension_numbers = #tpu.dot_dimension_numbers<[1], [0], [0], [1], [0, 0, 1, 1], [], []>} : vector<4x4xf32>, vector<4x512xf32>, vector<4x512xf32> -> vector<4x512xf32>
    %151 = arith.addf %147, %150 : vector<4x512xf32>
    %c16_i32_80 = arith.constant 16 : i32
    %152 = tpu.dynamic_rotate %112 by %c16_i32_80 dim 1 : vector<4x512xf32>, i32 -> vector<4x512xf32>
    %153 = vector.shape_cast %7 : vector<1x512xi1> to vector<1x512xi1>
    %154 = vector.broadcast %153 : vector<1x512xi1> to vector<4x512xi1>
    %155 = arith.select %154, %112, %152 : vector<4x512xi1>, vector<4x512xf32>
    %c496_i32_81 = arith.constant 496 : i32
    %156 = tpu.dynamic_rotate %112 by %c496_i32_81 dim 1 : vector<4x512xf32>, i32 -> vector<4x512xf32>
    %157 = vector.shape_cast %9 : vector<1x512xi1> to vector<1x512xi1>
    %158 = vector.broadcast %157 : vector<1x512xi1> to vector<4x512xi1>
    %159 = arith.select %158, %112, %156 : vector<4x512xi1>, vector<4x512xf32>
    %c2_82 = arith.constant 2 : index
    %c0_83 = arith.constant 0 : index
    %c0_84 = arith.constant 0 : index
    %160 = vector.load %arg4[%c2_82, %c0_83, %c0_84] : memref<9x4x4xf32, #tpu.memory_space<vmem>>, vector<1x4x4xf32>
    %161 = vector.shape_cast %160 : vector<1x4x4xf32> to vector<4x4xf32>
    %cst_85 = arith.constant dense<0.000000e+00> : vector<4x512xf32>
    %162 = tpu.matmul %161, %155, %cst_85 {dimension_numbers = #tpu.dot_dimension_numbers<[1], [0], [0], [1], [0, 0, 1, 1], [], []>} : vector<4x4xf32>, vector<4x512xf32>, vector<4x512xf32> -> vector<4x512xf32>
    %163 = arith.addf %151, %162 : vector<4x512xf32>
    %c5_86 = arith.constant 5 : index
    %c0_87 = arith.constant 0 : index
    %c0_88 = arith.constant 0 : index
    %164 = vector.load %arg4[%c5_86, %c0_87, %c0_88] : memref<9x4x4xf32, #tpu.memory_space<vmem>>, vector<1x4x4xf32>
    %165 = vector.shape_cast %164 : vector<1x4x4xf32> to vector<4x4xf32>
    %cst_89 = arith.constant dense<0.000000e+00> : vector<4x512xf32>
    %166 = tpu.matmul %165, %112, %cst_89 {dimension_numbers = #tpu.dot_dimension_numbers<[1], [0], [0], [1], [0, 0, 1, 1], [], []>} : vector<4x4xf32>, vector<4x512xf32>, vector<4x512xf32> -> vector<4x512xf32>
    %167 = arith.addf %163, %166 : vector<4x512xf32>
    %c8_90 = arith.constant 8 : index
    %c0_91 = arith.constant 0 : index
    %c0_92 = arith.constant 0 : index
    %168 = vector.load %arg4[%c8_90, %c0_91, %c0_92] : memref<9x4x4xf32, #tpu.memory_space<vmem>>, vector<1x4x4xf32>
    %169 = vector.shape_cast %168 : vector<1x4x4xf32> to vector<4x4xf32>
    %cst_93 = arith.constant dense<0.000000e+00> : vector<4x512xf32>
    %170 = tpu.matmul %169, %159, %cst_93 {dimension_numbers = #tpu.dot_dimension_numbers<[1], [0], [0], [1], [0, 0, 1, 1], [], []>} : vector<4x4xf32>, vector<4x512xf32>, vector<4x512xf32> -> vector<4x512xf32>
    %171 = arith.addf %167, %170 : vector<4x512xf32>
    %cst_94 = arith.constant dense<0.000000e+00> : vector<4xf32>
    %172 = vector.multi_reduction <add>, %171, %cst_94 [1] : vector<4x512xf32> to vector<4xf32>
    %173 = vector.shape_cast %172 : vector<4xf32> to vector<4x1xf32>
    %cst_95 = arith.constant 0.001953125 : f32
    %174 = vector.broadcast %cst_95 : f32 to vector<4x1xf32>
    %175 = arith.mulf %173, %174 : vector<4x1xf32>
    %176 = vector.broadcast %175 : vector<4x1xf32> to vector<4x512xf32>
    %177 = arith.subf %171, %176 : vector<4x512xf32>
    %178 = arith.mulf %177, %177 : vector<4x512xf32>
    %cst_96 = arith.constant dense<0.000000e+00> : vector<4xf32>
    %179 = vector.multi_reduction <add>, %178, %cst_96 [1] : vector<4x512xf32> to vector<4xf32>
    %180 = vector.shape_cast %179 : vector<4xf32> to vector<4x1xf32>
    %cst_97 = arith.constant 0.001953125 : f32
    %181 = vector.broadcast %cst_97 : f32 to vector<4x1xf32>
    %182 = arith.mulf %180, %181 : vector<4x1xf32>
    %c0_98 = arith.constant 0 : index
    %c0_99 = arith.constant 0 : index
    %183 = vector.load %arg7[%c0_98, %c0_99] : memref<4x1xf32, #tpu.memory_space<vmem>>, vector<4x1xf32>
    %cst_100 = arith.constant 9.99999974E-6 : f32
    %184 = vector.broadcast %cst_100 : f32 to vector<4x1xf32>
    %185 = arith.addf %182, %184 : vector<4x1xf32>
    %186 = math.rsqrt %185 : vector<4x1xf32>
    %187 = arith.mulf %183, %186 : vector<4x1xf32>
    %188 = vector.broadcast %187 : vector<4x1xf32> to vector<4x512xf32>
    %189 = arith.mulf %177, %188 : vector<4x512xf32>
    %c0_101 = arith.constant 0 : index
    %c0_102 = arith.constant 0 : index
    %190 = vector.load %arg8[%c0_101, %c0_102] : memref<4x1xf32, #tpu.memory_space<vmem>>, vector<4x1xf32>
    %191 = vector.broadcast %190 : vector<4x1xf32> to vector<4x512xf32>
    %192 = arith.addf %189, %191 : vector<4x512xf32>
    %193 = arith.addf %11, %192 : vector<4x512xf32>
    %c0_103 = arith.constant 0 : index
    %c0_104 = arith.constant 0 : index
    %194 = vector.load %arg10[%c0_103, %c0_104] : memref<4x512xf32, #tpu.memory_space<vmem>>, vector<4x512xf32>
    tpu.vector_store %arg10[%c0_103, %c0_104], %193 {strides = array<i32>} : memref<4x512xf32, #tpu.memory_space<vmem>>, vector<4x512xf32>,
    return
  }
}

</mosaic_0001>

<bundles_post_ra>
// kernel: tpu_custom_call.1
= control target key start
LH: loop header
LB: loop body
LE: loop exit
PB: predicated region body
PF: predicated region fallthrough
CT: control target
= control target key end

     0   :  { %s3682_s17 = smov 1   ;;  %v3683_v4 = vmov 0   ;;  %s4627_s0 = inlined_call_operand.vmem [shape: s32[1,512], index: 0, kind: input, shape index: {}]   ;;  %s4628_s1 = inlined_call_operand.vmem [shape: s32[1,512], index: 1, kind: input, shape index: {}]   ;;  %s4629_s2 = inlined_call_operand.vmem [shape: f32[4,512], index: 2, kind: input, shape index: {}]   ;;  %s4630_s3 = inlined_call_operand.vmem [shape: f32[9,4,4], index: 3, kind: input, shape index: {}]   ;;  %s4631_s4 = inlined_call_operand.vmem [shape: f32[9,4,4], index: 4, kind: input, shape index: {}]   ;;  %s4632_s5 = inlined_call_operand.vmem [shape: f32[4,1], index: 5, kind: input, shape index: {}]   ;;  %s4633_s6 = inlined_call_operand.vmem [shape: f32[4,1], index: 6, kind: input, shape index: {}]   ;;  %s4634_s7 = inlined_call_operand.vmem [shape: f32[4,1], index: 7, kind: input, shape index: {}]   ;;  %s4635_s8 = inlined_call_operand.vmem [shape: f32[4,1], index: 8, kind: input, shape index: {}]   ;;  %s4636_s9 = inlined_call_operand.<no memory space> [shape: f32[1,1], index: 9, kind: input, shape index: {}]   ;;  %s4637_s10 = inlined_call_operand.hbm [shape: f32[4,512], index: 10, kind: output, shape index: {}]  }
   0x1   :  { %v3747_v0 = vld [vmem:[%s4629_s2] sm:$0xff]  ;;  %v3752_v1 = vld [vmem:[%s4629_s2 + $0x8] sm:$0xff]  ;;  %3649 = vset.pattern.permute.xlu1 %v3683_v4 }
   0x2   :  { %52 = vrot.lane.b32.xlu0 %v3747_v0, %s3682_s17  ;;  %v3758_v2 = vcombine.high %v3752_v1, %v3752_v1  ;;  %v3762_v3 = vcombine.high %v3747_v0, %v3747_v0 }
   0x3   :  { %16 = vsyncpa [#allocation4], 0  ;;  %3648 = vset.pattern.permute.xlu0 %v3683_v4  ;;  %s3684_s18 = smov 127   ;;  %v3685_v5 = vmov 0.0   ;;  %v60_v6 = vlaneseq  ;;  %v37_v7 = vld [vmem:[%s4627_s0] sm:$0xf] }
   0x4   :  { %58 = vrot.lane.b32.xlu1 %v3758_v2, %s3682_s17  ;;  %290 = vmatprep.mubr.f32.mxu0 %v3685_v5  ;;  %vm39_vm0 = vcmp.eq.s32.totalorder %v37_v7, 0  ;;  %vm213_vm4 = vcmask 1043456   ;;  %s3686_s0 = smov 16   ;;  %v4654_v28 = vmov 0  ;;  %v3453_v33 = vld [vmem:[%s4630_s3 + $0xc] sm:$0xf] }
   0x5   :  { %361 = vmatprep.mubr.f32.mxu1 %v3685_v5  ;;  %v69_v8 = vshrl.u32 %v60_v6, 7  ;;  %v67_v10 = vsel %vm39_vm0, 1, %v3683_v4  ;;  %v3790_v12 = vand.u32 127, %v60_v6  ;;  %vm4643_vm7 = vcmask 31744   ;;  %s3687_s23 = smov 112  }
   0x6   :  { %54 = vrot.lane.b32.xlu0 %v3762_v3, %s3682_s17  ;;  %vm40_vm8 = vcmp.eq.s32.totalorder %v37_v7, 15  ;;  %v4656_v43 = vmov 0  ;;  %v4658_v47 = vmov 0  ;;  %v4660_v51 = vmov 0  ;;  %v38_v57 = vld [vmem:[%s4628_s1] sm:$0xf] }
   0x7   :  { %v3785_v9 = vsub.s32 0, %v69_v8  ;;  %v3788_v11 = vsub.s32 1, %v69_v8  ;;  %v3793_v14 = vsub.s32 2, %v69_v8  ;;  %v3795_v15 = vsub.s32 3, %v69_v8 }
   0x8   :  { %56 = vrot.lane.b32.xlu1 %v3752_v1, %s3682_s17  ;;  %vm4639_vm1 = vcmp.lt.s32.totalorder %v3790_v12, 1  ;;  %v105_v37 = vsel %vm40_vm8, 1, %v3683_v4  ;;  %vm4638_vm9 = vcmp.lt.s32.totalorder %v3790_v12, 127  ;;  %v4662_v54 = vmov 0 }
   0x9   :  { %v71_v13 = vrot.slane %v67_v10, %v3785_v9  ;;  %v75_v16 = vrot.slane %v67_v10, %v3788_v11  ;;  %v79_v19 = vrot.slane %v67_v10, %v3793_v14  ;;  %v83_v20 = vrot.slane %v67_v10, %v3795_v15 }
   0xa   :  { %92 = vrot.lane.b32.xlu0 %v3747_v0, %s3684_s18  ;;  %v109_v39 = vrot.slane %v105_v37, %v3785_v9  ;;  %v113_v40 = vrot.slane %v105_v37, %v3788_v11  ;;  %v121_v44 = vrot.slane %v105_v37, %v3795_v15  ;;  %v117_v48 = vrot.slane %v105_v37, %v3793_v14  ;;  %v3563_v37 = vld [vmem:[%s4631_s4 + $0x14] sm:$0xf] }
   0xb   :  { %vm3799_vm2 = vcmp.eq.s32.totalorder %v71_v13, 1  ;;  %vm3807_vm3 = vcmp.eq.s32.totalorder %v75_v16, 1  ;;  %vm3820_vm5 = vcmp.eq.s32.totalorder %v79_v19, 1  ;;  %vm3824_vm6 = vcmp.eq.s32.totalorder %v83_v20, 1  ;;  %v3556_v20 = vld [vmem:[%s4631_s4 + $0x8] sm:$0xf] }
   0xc   :  { %94 = vrot.lane.b32.xlu1 %v3762_v3, %s3684_s18  ;;  %v4655_v28 = vsel %vm3824_vm6, 4294967295, %v4654_v28  ;;  %vm3894_vm10 = vcmp.eq.s32.totalorder %v109_v39, 1  ;;  %vm3903_vm11 = vcmp.eq.s32.totalorder %v113_v40, 1  ;;  %vm3917_vm12 = vcmp.eq.s32.totalorder %v121_v44, 1 }
   0xd   :  { %v4657_v43 = vsel %vm3894_vm10, 4294967295, %v4656_v43  ;;  %v4659_v47 = vsel %vm3903_vm11, 4294967295, %v4658_v47  ;;  %v4661_v51 = vsel %vm3917_vm12, 4294967295, %v4660_v51  ;;  %vm3930_vm13 = vcmp.eq.s32.totalorder %v117_v48, 1 }
   0xe   :  { %96 = vrot.lane.b32.xlu0 %v3752_v1, %s3684_s18  ;;  %v4663_v54 = vsel %vm3930_vm13, 4294967295, %v4662_v54  ;;  %vm41_vm14 = vcmp.eq.s32.totalorder %v38_v57, 0  ;;  %vm42_vm15 = vcmp.eq.s32.totalorder %v38_v57, 15  ;;  %vm4640_vm0 = vcmp.lt.s32.totalorder %v3790_v12, 16 }
   0xf   :  { %v143_v58 = vsel %vm41_vm14, 1, %v3683_v4  ;;  %v181_v8 = vsel %vm42_vm15, 1, %v3683_v4  ;;  %v206_v4 = vld [vmem:[%s4630_s3] sm:$0xf] }
  0x10   :  { %98 = vrot.lane.b32.xlu1 %v3758_v2, %s3684_s18  ;;  %v151_v59 = vrot.slane %v143_v58, %v3788_v11  ;;  %v147_v60 = vrot.slane %v143_v58, %v3785_v9  ;;  %v155_v63 = vrot.slane %v143_v58, %v3793_v14  ;;  %v159_v6 = vrot.slane %v143_v58, %v3795_v15 }
  0x12   :  { %vm3965_vm8 = vcmp.eq.s32.totalorder %v151_v59, 1  ;;  %vm3974_vm14 = vcmp.eq.s32.totalorder %v147_v60, 1  ;;  %vm3991_vm15 = vcmp.eq.s32.totalorder %v159_v6, 1 }
  0x74   :  { %v53_v17 = vpop.permute.xlu0 %52 }
  0x76   :  { %v59_v21 = vpop.permute.xlu1 %58 }
  0x77   :  { %v66_v22 = vsel %vm4639_vm1, %v59_v21, %v53_v17 }
  0x78   :  { %v3814_v24 = vsel %vm3799_vm2, %v3747_v0, %v66_v22  ;;  %v55_v25 = vpop.permute.xlu0 %54  ;;  %v189_v22 = vrot.slane %v181_v8, %v3788_v11 }
  0x79   :  { %v65_v26 = vsel %vm4639_vm1, %v53_v17, %v55_v25  ;;  %130 = vrot.lane.b32.xlu0 %v3814_v24, %s3686_s0 }
  0x7a   :  { %v3831_v29 = vsel %vm3807_vm3, %v3762_v3, %v65_v26  ;;  %v57_v30 = vpop.permute.xlu1 %56 }
  0x7b   :  { %v63_v31 = vsel %vm4639_vm1, %v57_v30, %v59_v21  ;;  %v64_v32 = vsel %vm4639_vm1, %v55_v25, %v57_v30  ;;  %132 = vrot.lane.b32.xlu1 %v3831_v29, %s3686_s0  ;;  %3454 = vmatprep.subr.msk.mxu0 %vm213_vm4, %v3831_v29  ;;  %vm4645_vm1 = vcmp.lt.s32.totalorder %v3790_v12, 112 }
  0x7c   :  { %v3847_v34 = vsel %vm3820_vm5, %v3752_v1, %v64_v32  ;;  %v3852_v35 = vsel %vm3824_vm6, %v3758_v2, %v63_v31  ;;  %3455 = vmatpush1.msk.msra.mxu0 %vm213_vm4, %v3814_v24  ;;  %v93_v36 = vpop.permute.xlu0 %92  ;;  %v185_v32 = vrot.slane %v181_v8, %v3785_v9  ;;  %v193_v9 = vrot.slane %v181_v8, %v3793_v14 }
  0x7d   :  { %3457 = vmatprep.subr.msk.mxu1 %vm213_vm4, %v3852_v35  ;;  %136 = vrot.lane.b32.xlu0 %v3852_v35, %s3686_s0  ;;  %vm4690_vm6 = vcmask 31744  }
  0x7e   :  { %3458 = vmatpush1.msk.msra.mxu1 %vm213_vm4, %v3847_v34  ;;  %3456 = vmatmul.mubr.msk.f32.vlgmr.msra.gmra.mrb[0].mxu0 %vm4643_vm7, %v3453_v33  ;;  %v95_v38 = vpop.permute.xlu1 %94 }
  0x7f   :  { %134 = vrot.lane.b32.xlu1 %v3847_v34, %s3686_s0  ;;  %3459 = vmatmul.mubr.msk.f32.vlgmr.msra.gmra.mrb[0].mxu1 %vm4643_vm7, %v3453_v33  ;;  %v103_v42 = vsel %vm4638_vm9, %v93_v36, %v95_v38 }
  0x80   :  { %447 = vmatprep.mubr.f32.mxu0 %v3685_v5  ;;  %518 = vmatprep.mubr.f32.mxu1 %v3685_v5  ;;  %v97_v41 = vpop.permute.xlu0 %96  ;;  %v3911_v49 = vsel %vm3894_vm10, %v3747_v0, %v103_v42 }
  0x81   :  { %170 = vrot.lane.b32.xlu0 %v3831_v29, %s3687_s23  ;;  %v102_v46 = vsel %vm4638_vm9, %v95_v38, %v97_v41  ;;  %v197_v38 = vrot.slane %v181_v8, %v3795_v15 }
  0x82   :  { %v99_v45 = vpop.permute.xlu1 %98  ;;  %v3924_v52 = vsel %vm3903_vm11, %v3762_v3, %v102_v46  ;;  %vm4680_vm11 = vcmask 31744  }
  0x83   :  { %172 = vrot.lane.b32.xlu1 %v3847_v34, %s3687_s23  ;;  %v104_v50 = vsel %vm4638_vm9, %v99_v45, %v93_v36  ;;  %v101_v53 = vsel %vm4638_vm9, %v97_v41, %v99_v45  ;;  %vm3984_vm9 = vcmp.eq.s32.totalorder %v155_v63, 1  ;;  %v3466_v45 = vld [vmem:[%s4630_s3 + $0x18] sm:$0xf]  ;;  %vm4682_vm10 = vmmov %vm4680_vm11  ;;  %v3473_v63 = vld [vmem:[%s4630_s3 + $0x4] sm:$0xf] }
  0x84   :  { %v3937_v55 = vsel %vm3917_vm12, %v3758_v2, %v104_v50  ;;  %v3944_v56 = vsel %vm3930_vm13, %v3752_v1, %v101_v53  ;;  %vm4025_vm12 = vcmp.eq.s32.totalorder %v185_v32, 1  ;;  %vm4036_vm13 = vcmp.eq.s32.totalorder %v193_v9, 1 }
  0x85   :  { %168 = vrot.lane.b32.xlu0 %v3814_v24, %s3687_s23 }
  0x87   :  { %174 = vrot.lane.b32.xlu1 %v3852_v35, %s3687_s23 }
  0x89   :  { %688 = vrot.lane.b32.xlu0 %v3747_v0, %s3686_s0 }
  0x8b   :  { %690 = vrot.lane.b32.xlu1 %v3762_v3, %s3686_s0 }
  0x8d   :  { %694 = vrot.lane.b32.xlu0 %v3758_v2, %s3686_s0 }
  0x8f   :  { %692 = vrot.lane.b32.xlu1 %v3752_v1, %s3686_s0 }
  0x91   :  { %706 = vrot.lane.b32.xlu0 %v3762_v3, %s3687_s23 }
  0x93   :  { %708 = vrot.lane.b32.xlu1 %v3752_v1, %s3687_s23 }
  0x95   :  { %704 = vrot.lane.b32.xlu0 %v3747_v0, %s3687_s23 }
  0x97   :  { %710 = vrot.lane.b32.xlu1 %v3758_v2, %s3687_s23 }
  0x99   :  { %1205 = vrot.lane.b32.xlu0 %v3911_v49, %s3686_s0 }
  0x9b   :  { %1207 = vrot.lane.b32.xlu1 %v3924_v52, %s3686_s0 }
  0x9d   :  { %1211 = vrot.lane.b32.xlu0 %v3937_v55, %s3686_s0 }
  0x9f   :  { %1209 = vrot.lane.b32.xlu1 %v3944_v56, %s3686_s0 }
  0xa1   :  { %1223 = vrot.lane.b32.xlu0 %v3924_v52, %s3687_s23 }
  0xa3   :  { %1225 = vrot.lane.b32.xlu1 %v3944_v56, %s3687_s23 }
  0xa5   :  { %1221 = vrot.lane.b32.xlu0 %v3911_v49, %s3687_s23 }
  0xa7   :  { %1227 = vrot.lane.b32.xlu1 %v3937_v55, %s3687_s23 }
  0xeb   :  { %v131_v61 = vpop.permute.xlu0 %130 }
  0xed   :  { %v133_v7 = vpop.permute.xlu1 %132 }
  0xee   :  { %v141_v10 = vsel %vm4640_vm0, %v131_v61, %v133_v7 }
  0xef   :  { %v137_v16 = vpop.permute.xlu0 %136  ;;  %v165_v17 = vsel %vm3965_vm8, %v3831_v29, %v141_v10 }
  0xf0   :  { %v142_v19 = vsel %vm4640_vm0, %v137_v16, %v131_v61  ;;  %3460 = vmatprep.subr.msk.mxu0 %vm213_vm4, %v165_v17 }
  0xf1   :  { %v164_v25 = vsel %vm3974_vm14, %v3814_v24, %v142_v19  ;;  %v135_v26 = vpop.permute.xlu1 %134 }
  0xf2   :  { %v139_v30 = vsel %vm4640_vm0, %v135_v26, %v137_v16  ;;  %v140_v31 = vsel %vm4640_vm0, %v133_v7, %v135_v26  ;;  %3461 = vmatpush1.msk.msra.mxu0 %vm213_vm4, %v164_v25  ;;  %vm4014_vm0 = vcmp.eq.s32.totalorder %v189_v22, 1 }
  0xf3   :  { %v166_v11 = vsel %vm3984_vm9, %v3847_v34, %v140_v31  ;;  %v171_v33 = vpop.permute.xlu0 %170  ;;  %3462 = vmatmul.mubr.msk.f32.vlgmr.msra.gmra.mrb[0].mxu0 %vm4643_vm7, %v206_v4  ;;  %v167_v36 = vsel %vm3991_vm15, %v3852_v35, %v139_v30  ;;  %v3480_v31 = vld [vmem:[%s4630_s3 + $0x10] sm:$0xf] }
  0xf4   :  { %3463 = vmatprep.subr.msk.mxu1 %vm213_vm4, %v167_v36  ;;  %606 = vmatprep.mubr.f32.mxu0 %v3685_v5 }
  0xf5   :  { %v173_v39 = vpop.permute.xlu1 %172  ;;  %3464 = vmatpush1.msk.msra.mxu1 %vm213_vm4, %v166_v11 }
  0xf6   :  { %v178_v40 = vsel %vm4645_vm1, %v171_v33, %v173_v39  ;;  %3465 = vmatmul.mubr.msk.f32.vlgmr.msra.gmra.mrb[0].mxu1 %vm4643_vm7, %v206_v4  ;;  %vm4043_vm7 = vcmp.eq.s32.totalorder %v197_v38, 1 }
  0xf7   :  { %v169_v42 = vpop.permute.xlu0 %168  ;;  %v203_v14 = vsel %vm4014_vm0, %v3831_v29, %v178_v40  ;;  %677 = vmatprep.mubr.f32.mxu1 %v3685_v5 }
  0xf8   :  { %v179_v15 = vsel %vm4645_vm1, %v169_v42, %v171_v33  ;;  %3467 = vmatprep.subr.msk.mxu0 %vm213_vm4, %v203_v14 }
  0xf9   :  { %v202_v29 = vsel %vm4025_vm12, %v3814_v24, %v179_v15  ;;  %v175_v48 = vpop.permute.xlu1 %174 }
  0xfa   :  { %v177_v50 = vsel %vm4645_vm1, %v173_v39, %v175_v48  ;;  %v180_v53 = vsel %vm4645_vm1, %v175_v48, %v169_v42  ;;  %3468 = vmatpush1.msk.msra.mxu0 %vm213_vm4, %v202_v29  ;;  %vm4681_vm1 = vcmp.lt.s32.totalorder %v3790_v12, 16  ;;  %v3487_v42 = vld [vmem:[%s4630_s3 + $0x1c] sm:$0xf] }
  0xfb   :  { %v204_v57 = vsel %vm4036_vm13, %v3847_v34, %v177_v50  ;;  %v689_v58 = vpop.permute.xlu0 %688  ;;  %3469 = vmatmul.mubr.msk.f32.vlgmr.msra.gmra.mrb[0].mxu0 %vm4680_vm11, %v3466_v45  ;;  %v205_v24 = vsel %vm4043_vm7, %v3852_v35, %v180_v53  ;;  %vm4683_vm11 = vmmov %vm4681_vm1 }
  0xfc   :  { %3470 = vmatprep.subr.msk.mxu1 %vm213_vm4, %v205_v24  ;;  %801 = vmatprep.mubr.f32.mxu0 %v3685_v5 }
  0xfd   :  { %v691_v59 = vpop.permute.xlu1 %690  ;;  %3471 = vmatpush1.msk.msra.mxu1 %vm213_vm4, %v204_v57 }
  0xfe   :  { %v698_v60 = vsel %vm4681_vm1, %v689_v58, %v691_v59  ;;  %3472 = vmatmul.mubr.msk.f32.vlgmr.msra.gmra.mrb[0].mxu1 %vm4682_vm10, %v3466_v45  ;;  %vm4684_vm10 = vmmov %vm4681_vm1 }
  0xff   :  { %v695_v34 = vpop.permute.xlu0 %694  ;;  %v701_v61 = vsel %vm3965_vm8, %v3762_v3, %v698_v60  ;;  %872 = vmatprep.mubr.f32.mxu1 %v3685_v5 }
 0x100   :  { %v699_v35 = vsel %vm4683_vm11, %v695_v34, %v689_v58  ;;  %3474 = vmatprep.subr.msk.mxu0 %vm213_vm4, %v701_v61  ;;  %vm4685_vm11 = vcmask 31744   ;;  %v3494_v58 = vld [vmem:[%s4630_s3 + $0x8] sm:$0xf] }
 0x101   :  { %v700_v6 = vsel %vm3974_vm14, %v3747_v0, %v699_v35  ;;  %v693_v7 = vpop.permute.xlu1 %692 }
 0x102   :  { %v696_v8 = vsel %vm4681_vm1, %v693_v7, %v695_v34  ;;  %v697_v10 = vsel %vm4684_vm10, %v691_v59, %v693_v7  ;;  %3475 = vmatpush1.msk.msra.mxu0 %vm213_vm4, %v700_v6  ;;  %vm4686_vm1 = vcmp.lt.s32.totalorder %v3790_v12, 112  ;;  %vm4687_vm10 = vmmov %vm4685_vm11 }
 0x103   :  { %v702_v16 = vsel %vm3984_vm9, %v3752_v1, %v697_v10  ;;  %v707_v17 = vpop.permute.xlu0 %706  ;;  %3476 = vmatmul.mubr.msk.f32.vlgmr.msra.gmra.mrb[0].mxu0 %vm4685_vm11, %v3473_v63  ;;  %v703_v19 = vsel %vm3991_vm15, %v3758_v2, %v696_v8  ;;  %3481 = vmatprep.subr.msk.mxu0 %vm213_vm4, %v3762_v3  ;;  %vm4688_vm11 = vmmov %vm4686_vm1 }
 0x104   :  { %3477 = vmatprep.subr.msk.mxu1 %vm213_vm4, %v703_v19  ;;  %3482 = vmatpush1.msk.msra.mxu0 %vm213_vm4, %v3747_v0 }
 0x105   :  { %v709_v4 = vpop.permute.xlu1 %708  ;;  %3478 = vmatpush1.msk.msra.mxu1 %vm213_vm4, %v702_v16  ;;  %960 = vmatprep.mubr.f32.mxu0 %v3685_v5 }
 0x106   :  { %v713_v22 = vsel %vm4686_vm1, %v707_v17, %v709_v4  ;;  %3479 = vmatmul.mubr.msk.f32.vlgmr.msra.gmra.mrb[0].mxu1 %vm4687_vm10, %v3473_v63  ;;  %3484 = vmatprep.subr.msk.mxu1 %vm213_vm4, %v3758_v2  ;;  %vm4689_vm10 = vmmov %vm4686_vm1 }
 0x107   :  { %v705_v25 = vpop.permute.xlu0 %704  ;;  %3485 = vmatpush1.msk.msra.mxu1 %vm213_vm4, %v3752_v1  ;;  %1031 = vmatprep.mubr.f32.mxu1 %v3685_v5  ;;  %v717_v26 = vsel %vm4014_vm0, %v3762_v3, %v713_v22 }
 0x108   :  { %v714_v30 = vsel %vm4688_vm11, %v705_v25, %v707_v17  ;;  %3488 = vmatprep.subr.msk.mxu0 %vm213_vm4, %v717_v26  ;;  %vm4691_vm11 = vcmp.lt.s32.totalorder %v3790_v12, 16 }
 0x109   :  { %v716_v32 = vsel %vm4025_vm12, %v3747_v0, %v714_v30  ;;  %v711_v11 = vpop.permute.xlu1 %710 }
 0x10a   :  { %v712_v33 = vsel %vm4686_vm1, %v709_v4, %v711_v11  ;;  %v715_v3 = vsel %vm4689_vm10, %v711_v11, %v705_v25  ;;  %vm4692_vm1 = vmmov %vm4690_vm6 }
 0x10b   :  { %v1206_v36 = vpop.permute.xlu0 %1205  ;;  %3483 = vmatmul.mubr.msk.f32.vlgmr.msra.gmra.mrb[0].mxu0 %vm4690_vm6, %v3480_v31  ;;  %v719_v9 = vsel %vm4043_vm7, %v3758_v2, %v715_v3  ;;  %v718_v38 = vsel %vm4036_vm13, %v3752_v1, %v712_v33  ;;  %vm4693_vm6 = vmmov %vm4691_vm11 }
 0x10c   :  { %3489 = vmatpush1.msk.msra.mxu0 %vm213_vm4, %v716_v32  ;;  %3491 = vmatprep.subr.msk.mxu1 %vm213_vm4, %v719_v9  ;;  %vm4694_vm10 = vmmov %vm4693_vm6 }
 0x10d   :  { %v1208_v0 = vpop.permute.xlu1 %1207  ;;  %1123 = vmatprep.mubr.f32.mxu0 %v3685_v5 }
 0x10e   :  { %v1215_v39 = vsel %vm4691_vm11, %v1206_v36, %v1208_v0  ;;  %3486 = vmatmul.mubr.msk.f32.vlgmr.msra.gmra.mrb[0].mxu1 %vm4692_vm1, %v3480_v31  ;;  %vm4695_vm11 = vmmov %vm4693_vm6 }
 0x10f   :  { %v1212_v40 = vpop.permute.xlu0 %1211  ;;  %3492 = vmatpush1.msk.msra.mxu1 %vm213_vm4, %v718_v38  ;;  %v1218_v2 = vsel %vm3965_vm8, %v3924_v52, %v1215_v39  ;;  %1194 = vmatprep.mubr.f32.mxu1 %v3685_v5 }
 0x110   :  { %v1216_v1 = vsel %vm4693_vm6, %v1212_v40, %v1206_v36  ;;  %3495 = vmatprep.subr.msk.mxu0 %vm213_vm4, %v1218_v2  ;;  %vm4696_vm6 = vmmov %vm4692_vm1 }
 0x111   :  { %v1217_v14 = vsel %vm3974_vm14, %v3911_v49, %v1216_v1  ;;  %v1210_v15 = vpop.permute.xlu1 %1209 }
 0x112   :  { %v1213_v45 = vsel %vm4694_vm10, %v1210_v15, %v1212_v40  ;;  %v1214_v29 = vsel %vm4695_vm11, %v1208_v0, %v1210_v15  ;;  %vm4697_vm10 = vcmp.lt.s32.totalorder %v3790_v12, 112  ;;  %vm4698_vm11 = vmmov %vm4692_vm1 }
 0x113   :  { %3490 = vmatmul.mubr.msk.f32.vlgmr.msra.gmra.mrb[0].mxu0 %vm4692_vm1, %v3487_v42  ;;  %v1220_v48 = vsel %vm3991_vm15, %v3937_v55, %v1213_v45  ;;  %v1224_v50 = vpop.permute.xlu0 %1223  ;;  %v1219_v57 = vsel %vm3984_vm9, %v3944_v56, %v1214_v29  ;;  %vm4699_vm1 = vmmov %vm4697_vm10  ;;  %v1767_v29 = vld [vmem:[%s4633_s6] sm:$0xf] }
 0x114   :  { %3496 = vmatpush1.msk.msra.mxu0 %vm213_vm4, %v1217_v14  ;;  %3498 = vmatprep.subr.msk.mxu1 %vm213_vm4, %v1220_v48 }
 0x115   :  { %3502 = vmatprep.subr.msk.mxu0 %vm213_vm4, %v3924_v52  ;;  %v1226_v53 = vpop.permute.xlu1 %1225  ;;  %1318 = vmatprep.mubr.f32.mxu0 %v3685_v5 }
 0x116   :  { %3493 = vmatmul.mubr.msk.f32.vlgmr.msra.gmra.mrb[0].mxu1 %vm4696_vm6, %v3487_v42  ;;  %v1230_v24 = vsel %vm4697_vm10, %v1224_v50, %v1226_v53  ;;  %vm4700_vm10 = vmmov %vm4699_vm1 }
 0x117   :  { %3499 = vmatpush1.msk.msra.mxu1 %vm213_vm4, %v1219_v57  ;;  %1389 = vmatprep.mubr.f32.mxu1 %v3685_v5  ;;  %v1222_v60 = vpop.permute.xlu0 %1221  ;;  %v1234_v61 = vsel %vm4014_vm0, %v3924_v52, %v1230_v24  ;;  %v3501_v52 = vld [vmem:[%s4630_s3 + $0x14] sm:$0xf]  ;;  %v1754_v57 = vld [vmem:[%s4632_s5] sm:$0xf] }
 0x118   :  { %3505 = vmatprep.subr.msk.mxu1 %vm213_vm4, %v3937_v55  ;;  %v1231_v63 = vsel %vm4700_vm10, %v1222_v60, %v1224_v50 }
 0x119   :  { %v1228_v59 = vpop.permute.xlu1 %1227  ;;  %v1233_v6 = vsel %vm4025_vm12, %v3911_v49, %v1231_v63  ;;  %v1781_v63 = vstv %s4636_s9 }
 0x11a   :  { %v1232_v34 = vsel %vm4699_vm1, %v1228_v59, %v1222_v60 }
 0x11b   :  { %3497 = vmatmul.mubr.msk.f32.vlgmr.msra.gmra.mrb[0].mxu0 %vm4698_vm11, %v3494_v58  ;;  %v1236_v35 = vsel %vm4043_vm7, %v3937_v55, %v1232_v34  ;;  %vm4701_vm11 = vmmov %vm4699_vm1 }
 0x11c   :  { %3503 = vmatpush1.msk.msra.mxu0 %vm213_vm4, %v3911_v49  ;;  %1481 = vmatprep.mubr.f32.mxu0 %v3685_v5  ;;  %v1229_v7 = vsel %vm4701_vm11, %v1226_v53, %v1228_v59  ;;  %vm4702_vm1 = vmmov %vm4696_vm6  ;;  %v3508_v49 = vld [vmem:[%s4630_s3 + $0x20] sm:$0xf] }
 0x11d   :  { %3509 = vmatprep.subr.msk.mxu0 %vm213_vm4, %v1234_v61  ;;  %v1235_v55 = vsel %vm4036_vm13, %v3944_v56, %v1229_v7  ;;  %vm4704_vm10 = vmmov %vm4702_vm1 }
 0x11e   :  { %3500 = vmatmul.mubr.msk.f32.vlgmr.msra.gmra.mrb[0].mxu1 %vm4696_vm6, %v3494_v58  ;;  %vm4703_vm6 = vmmov %vm4702_vm1 }
 0x11f   :  { %3506 = vmatpush1.msk.msra.mxu1 %vm213_vm4, %v3944_v56  ;;  %1552 = vmatprep.mubr.f32.mxu1 %v3685_v5  ;;  %vm4705_vm11 = vmmov %vm4702_vm1 }
 0x120   :  { %3512 = vmatprep.subr.msk.mxu1 %vm213_vm4, %v1236_v35 }
 0x123   :  { %3504 = vmatmul.mubr.msk.f32.vlgmr.msra.gmra.mrb[0].mxu0 %vm4702_vm1, %v3501_v52 }
 0x124   :  { %3510 = vmatpush1.msk.msra.mxu0 %vm213_vm4, %v1233_v6  ;;  %1644 = vmatprep.mubr.f32.mxu0 %v3685_v5 }
 0x126   :  { %3507 = vmatmul.mubr.msk.f32.vlgmr.msra.gmra.mrb[0].mxu1 %vm4703_vm6, %v3501_v52 }
 0x127   :  { %3513 = vmatpush1.msk.msra.mxu1 %vm213_vm4, %v1235_v55  ;;  %1715 = vmatprep.mubr.f32.mxu1 %v3685_v5 }
 0x12b   :  { %3511 = vmatmul.mubr.msk.f32.vlgmr.msra.gmra.mrb[0].mxu0 %vm4704_vm10, %v3508_v49 }
 0x12c   :  { %1936 = vmatprep.mubr.f32.mxu0 %v3685_v5 }
 0x12e   :  { %3514 = vmatmul.mubr.msk.f32.vlgmr.msra.gmra.mrb[0].mxu1 %vm4705_vm11, %v3508_v49 }
 0x12f   :  { %2007 = vmatprep.mubr.f32.mxu1 %v3685_v5 }
 0x1fe   :  { %v1646_v8 = vpop.f32.mrb[0].mxu0 }
 0x1ff   :  { %v1726_v56 = vsel %vm213_vm4, %v1646_v8, 0.0  ;;  %v1648_v10 = vpop.f32.mrb[1].mxu0 }
 0x200   :  { %v1727_v16 = vsel %vm213_vm4, %v1648_v10, 0.0 }
 0x201   :  { %v1728_v17 = vadd.f32 %v1727_v16, %v1726_v56  ;;  %v1717_v19 = vpop.f32.mrb[0].mxu1 }
 0x202   :  { %v1729_v4 = vsel %vm213_vm4, %v1717_v19, 0.0  ;;  %v1719_v22 = vpop.f32.mrb[1].mxu1 }
 0x203   :  { %v1730_v25 = vadd.f32 %v1729_v4, %v1728_v17  ;;  %v1731_v26 = vsel %vm213_vm4, %v1719_v22, 0.0 }
 0x205   :  { %v1732_v30 = vadd.f32 %v1731_v26, %v1730_v25 }
 0x207   :  { %1733 = vadd.xlane.f32.xlu0 %v1732_v30 }
 0x294   :  { %v1734_v31 = vpop.xlane.xlu0 %1733 }
 0x295   :  { %v1735_v32 = vmul.f32 0.001953125, %v1734_v31 }
 0x297   :  { %v1736_v11 = vsub.f32 %v1646_v8, %v1735_v32  ;;  %v1737_v33 = vsub.f32 %v1648_v10, %v1735_v32  ;;  %v1738_v3 = vsub.f32 %v1717_v19, %v1735_v32  ;;  %v1739_v36 = vsub.f32 %v1719_v22, %v1735_v32 }
 0x299   :  { %v1740_v9 = vmul.f32 %v1736_v11, %v1736_v11  ;;  %v1741_v38 = vmul.f32 %v1737_v33, %v1737_v33  ;;  %v1742_v0 = vmul.f32 %v1738_v3, %v1738_v3  ;;  %v1743_v39 = vmul.f32 %v1739_v36, %v1739_v36 }
 0x29b   :  { %v1744_v40 = vsel %vm213_vm4, %v1740_v9, 0.0  ;;  %v1745_v2 = vsel %vm213_vm4, %v1741_v38, 0.0  ;;  %v1747_v42 = vsel %vm213_vm4, %v1742_v0, 0.0  ;;  %v1749_v15 = vsel %vm213_vm4, %v1743_v39, 0.0 }
 0x29c   :  { %v1746_v1 = vadd.f32 %v1745_v2, %v1744_v40 }
 0x29e   :  { %v1748_v14 = vadd.f32 %v1747_v42, %v1746_v1 }
 0x2a0   :  { %v1750_v45 = vadd.f32 %v1749_v15, %v1748_v14 }
 0x2a2   :  { %1751 = vadd.xlane.f32.xlu1 %v1750_v45 }
 0x2b3   :  { %1770 = vperm.xlu1 %3649, %v1767_v29  }
 0x32f   :  { %v1752_v48 = vpop.xlane.xlu1 %1751 }
 0x330   :  { %v1753_v50 = vmul.f32 0.001953125, %v1752_v48 }
 0x332   :  { %v1755_v53 = vadd.f32 1e-05, %v1753_v50 }
 0x333   :  { %v1771_v60 = vpop.permute.xlu1 %1770 }
 0x334   :  { %3652 = vrsqrt.f32 %v1755_v53 }
 0x33e   :  { %v3653_v58 = vpop.eup %3652 }
 0x33f   :  { %v1757_v24 = vmul.f32 %v3653_v58, %v1754_v57 }
 0x341   :  { %1760 = vperm.xlu0 %3648, %v1757_v24   ;;  %v1854_v24 = vld [vmem:[%s4631_s4] sm:$0xf] }
 0x3c0   :  { %v1761_v59 = vpop.permute.xlu0 %1760 }
 0x3c1   :  { %v1763_v34 = vmul.f32 %v1761_v59, %v1736_v11  ;;  %v1764_v61 = vmul.f32 %v1761_v59, %v1737_v33  ;;  %v1765_v35 = vmul.f32 %v1761_v59, %v1738_v3  ;;  %v1766_v7 = vmul.f32 %v1761_v59, %v1739_v36  ;;  %v3515_v33 = vld [vmem:[%s4631_s4 + $0xc] sm:$0xf] }
 0x3c3   :  { %v1773_v52 = vadd.f32 %v1771_v60, %v1763_v34  ;;  %v1775_v6 = vadd.f32 %v1771_v60, %v1765_v35  ;;  %v1774_v55 = vadd.f32 %v1771_v60, %v1764_v61  ;;  %v1776_v56 = vadd.f32 %v1771_v60, %v1766_v7 }
 0x3c5   :  { %vm1777_vm1 = vcmp.ge.f32.partialorder %v1773_v52, 0.0  ;;  %vm1779_vm6 = vcmp.ge.f32.partialorder %v1775_v6, 0.0  ;;  %v1782_v49 = vmul.f32 %v1781_v63, %v1773_v52  ;;  %v1784_v8 = vmul.f32 %v1781_v63, %v1775_v6 }
 0x3c6   :  { %v1783_v10 = vmul.f32 %v1781_v63, %v1774_v55  ;;  %vm1778_vm10 = vcmp.ge.f32.partialorder %v1774_v55, 0.0  ;;  %v1785_v19 = vmul.f32 %v1781_v63, %v1776_v56  ;;  %vm1780_vm11 = vcmp.ge.f32.partialorder %v1776_v56, 0.0 }
 0x3c7   :  { %v4238_v16 = vsel %vm1777_vm1, %v1773_v52, %v1782_v49  ;;  %v4240_v17 = vsel %vm1779_vm6, %v1775_v6, %v1784_v8  ;;  %vm4706_vm1 = vcmp.lt.s32.totalorder %v3790_v12, 1 }
 0x3c8   :  { %1810 = vrot.lane.b32.xlu0 %v4240_v17, %s3684_s18  ;;  %1790 = vrot.lane.b32.xlu1 %v4238_v16, %s3682_s17  ;;  %v4246_v4 = vsel %vm1778_vm10, %v1774_v55, %v1783_v10  ;;  %v4250_v22 = vsel %vm1780_vm11, %v1776_v56, %v1785_v19  ;;  %vm4707_vm6 = vmmov %vm4706_vm1  ;;  %v3528_v56 = vld [vmem:[%s4631_s4 + $0x18] sm:$0xf] }
 0x3c9   :  { %vm4709_vm10 = vmmov %vm4706_vm1 }
 0x3ca   :  { %vm4710_vm11 = vmmov %vm4706_vm1 }
 0x3cc   :  { %1792 = vrot.lane.b32.xlu1 %v4246_v4, %s3682_s17 }
 0x3d0   :  { %1796 = vrot.lane.b32.xlu1 %v4250_v22, %s3682_s17 }
 0x3d4   :  { %1794 = vrot.lane.b32.xlu1 %v4240_v17, %s3682_s17 }
 0x3d8   :  { %1806 = vrot.lane.b32.xlu1 %v4238_v16, %s3684_s18 }
 0x3dc   :  { %1808 = vrot.lane.b32.xlu1 %v4246_v4, %s3684_s18 }
 0x3e0   :  { %1812 = vrot.lane.b32.xlu1 %v4250_v22, %s3684_s18 }
 0x43a   :  { %v1791_v25 = vpop.permute.xlu1 %1790  ;;  %v1811_v0 = vpop.permute.xlu0 %1810 }
 0x43e   :  { %v1793_v26 = vpop.permute.xlu1 %1792 }
 0x43f   :  { %v1800_v30 = vsel %vm4706_vm1, %v1791_v25, %v1793_v26 }
 0x440   :  { %v4267_v31 = vsel %vm3807_vm3, %v4246_v4, %v1800_v30  ;;  %vm4708_vm3 = vcmask 31744  }
 0x441   :  { %1824 = vrot.lane.b32.xlu1 %v4267_v31, %s3686_s0  ;;  %3516 = vmatprep.subr.msk.mxu0 %vm213_vm4, %v4267_v31  ;;  %vm4712_vm1 = vmmov %vm4708_vm3 }
 0x442   :  { %v1797_v32 = vpop.permute.xlu1 %1796 }
 0x443   :  { %v1801_v11 = vsel %vm4707_vm6, %v1797_v32, %v1791_v25 }
 0x444   :  { %v4281_v23 = vsel %vm3799_vm2, %v4238_v16, %v1801_v11  ;;  %vm4711_vm2 = vnez %v4655_v28 }
 0x445   :  { %1822 = vrot.lane.b32.xlu0 %v4281_v23, %s3686_s0  ;;  %3517 = vmatpush1.msk.msra.mxu0 %vm213_vm4, %v4281_v23 }
 0x446   :  { %v1795_v3 = vpop.permute.xlu1 %1794  ;;  %3518 = vmatmul.mubr.msk.f32.vlgmr.msra.gmra.mrb[2].mxu0 %vm4708_vm3, %v3515_v33  ;;  %vm4715_vm3 = vnez %v4657_v43 }
 0x447   :  { %v1798_v36 = vsel %vm4709_vm10, %v1795_v3, %v1797_v32  ;;  %v1799_v9 = vsel %vm4710_vm11, %v1793_v26, %v1795_v3  ;;  %2093 = vmatprep.mubr.f32.mxu0 %v3685_v5  ;;  %vm4716_vm10 = vnez %v4659_v47 }
 0x448   :  { %v4296_v18 = vsel %vm3820_vm5, %v4240_v17, %v1799_v9  ;;  %v4301_v38 = vsel %vm4711_vm2, %v4250_v22, %v1798_v36  ;;  %vm4713_vm5 = vcmp.lt.s32.totalorder %v3790_v12, 127  ;;  %v3535_v9 = vld [vmem:[%s4631_s4 + $0x4] sm:$0xf] }
 0x449   :  { %1826 = vrot.lane.b32.xlu1 %v4296_v18, %s3686_s0  ;;  %1828 = vrot.lane.b32.xlu0 %v4301_v38, %s3686_s0  ;;  %vm4714_vm6 = vmmov %vm4713_vm5 }
 0x44a   :  { %3519 = vmatprep.subr.msk.mxu1 %vm213_vm4, %v4301_v38  ;;  %v1807_v27 = vpop.permute.xlu1 %1806  ;;  %vm4717_vm11 = vmmov %vm4713_vm5 }
 0x44b   :  { %3520 = vmatpush1.msk.msra.mxu1 %vm213_vm4, %v4296_v18  ;;  %vm4718_vm2 = vmmov %vm4713_vm5 }
 0x44c   :  { %3521 = vmatmul.mubr.msk.f32.vlgmr.msra.gmra.mrb[2].mxu1 %vm4712_vm1, %v3515_v33  ;;  %vm4719_vm1 = vnez %v4663_v54 }
 0x44d   :  { %1842 = vrot.lane.b32.xlu1 %v4296_v18, %s3687_s23  ;;  %1840 = vrot.lane.b32.xlu0 %v4267_v31, %s3687_s23 }
 0x44e   :  { %2164 = vmatprep.mubr.f32.mxu1 %v3685_v5  ;;  %v1809_v28 = vpop.permute.xlu1 %1808 }
 0x44f   :  { %v1815_v39 = vsel %vm4713_vm5, %v1809_v28, %v1811_v0  ;;  %v1816_v40 = vsel %vm4714_vm6, %v1807_v27, %v1809_v28  ;;  %vm4720_vm5 = vnez %v4661_v51  ;;  %vm4721_vm6 = vcmp.lt.s32.totalorder %v3790_v12, 16 }
 0x450   :  { %v4344_v1 = vsel %vm4715_vm3, %v4238_v16, %v1816_v40  ;;  %v4349_v42 = vsel %vm4716_vm10, %v4246_v4, %v1815_v39  ;;  %vm4722_vm3 = vmmov %vm4721_vm6 }
 0x451   :  { %1844 = vrot.lane.b32.xlu1 %v4301_v38, %s3687_s23  ;;  %1838 = vrot.lane.b32.xlu0 %v4281_v23, %s3687_s23  ;;  %vm4723_vm10 = vmmov %vm4722_vm3 }
 0x452   :  { %v1813_v2 = vpop.permute.xlu1 %1812 }
 0x453   :  { %v1814_v14 = vsel %vm4717_vm11, %v1811_v0, %v1813_v2  ;;  %v1817_v15 = vsel %vm4718_vm2, %v1813_v2, %v1807_v27  ;;  %vm4724_vm11 = vmmov %vm4722_vm3  ;;  %vm4725_vm2 = vcmask 31744  }
 0x454   :  { %v4362_v43 = vsel %vm4719_vm1, %v4240_v17, %v1814_v14  ;;  %v4367_v47 = vsel %vm4720_vm5, %v4250_v22, %v1817_v15  ;;  %vm4726_vm1 = vcmp.lt.s32.totalorder %v3790_v12, 112  ;;  %vm4727_vm5 = vmmov %vm4725_vm2 }
 0x455   :  { %2336 = vrot.lane.b32.xlu1 %v4246_v4, %s3686_s0  ;;  %2334 = vrot.lane.b32.xlu0 %v4238_v16, %s3686_s0 }
 0x459   :  { %2338 = vrot.lane.b32.xlu1 %v4240_v17, %s3686_s0  ;;  %2340 = vrot.lane.b32.xlu0 %v4250_v22, %s3686_s0 }
 0x45d   :  { %2354 = vrot.lane.b32.xlu1 %v4240_v17, %s3687_s23  ;;  %2352 = vrot.lane.b32.xlu0 %v4246_v4, %s3687_s23 }
 0x461   :  { %2356 = vrot.lane.b32.xlu1 %v4250_v22, %s3687_s23  ;;  %2350 = vrot.lane.b32.xlu0 %v4238_v16, %s3687_s23 }
 0x465   :  { %2855 = vrot.lane.b32.xlu0 %v4344_v1, %s3686_s0  ;;  %2857 = vrot.lane.b32.xlu1 %v4349_v42, %s3686_s0 }
 0x469   :  { %2861 = vrot.lane.b32.xlu0 %v4367_v47, %s3686_s0  ;;  %2859 = vrot.lane.b32.xlu1 %v4362_v43, %s3686_s0 }
 0x46d   :  { %2873 = vrot.lane.b32.xlu0 %v4349_v42, %s3687_s23  ;;  %2875 = vrot.lane.b32.xlu1 %v4362_v43, %s3687_s23 }
 0x471   :  { %2871 = vrot.lane.b32.xlu0 %v4344_v1, %s3687_s23  ;;  %2877 = vrot.lane.b32.xlu1 %v4367_v47, %s3687_s23 }
 0x4b3   :  { %v1825_v51 = vpop.permute.xlu1 %1824 }
 0x4b7   :  { %v1823_v54 = vpop.permute.xlu0 %1822 }
 0x4b8   :  { %v1832_v45 = vsel %vm4721_vm6, %v1823_v54, %v1825_v51  ;;  %vm4728_vm6 = vmmov %vm4726_vm1 }
 0x4b9   :  { %v1835_v29 = vsel %vm3965_vm8, %v4267_v31, %v1832_v45 }
 0x4ba   :  { %3522 = vmatprep.subr.msk.mxu0 %vm213_vm4, %v1835_v29 }
 0x4bb   :  { %v1829_v48 = vpop.permute.xlu0 %1828  ;;  %v1827_v50 = vpop.permute.xlu1 %1826 }
 0x4bc   :  { %v1833_v53 = vsel %vm4722_vm3, %v1829_v48, %v1823_v54  ;;  %v1830_v57 = vsel %vm4723_vm10, %v1827_v50, %v1829_v48  ;;  %v1831_v58 = vsel %vm4724_vm11, %v1825_v51, %v1827_v50  ;;  %vm4729_vm3 = vmmov %vm4726_vm1 }
 0x4bd   :  { %v1834_v59 = vsel %vm3974_vm14, %v4281_v23, %v1833_v53  ;;  %v1836_v60 = vsel %vm3984_vm9, %v4296_v18, %v1831_v58  ;;  %v1837_v34 = vsel %vm3991_vm15, %v4301_v38, %v1830_v57  ;;  %vm4730_vm10 = vmmov %vm4726_vm1 }
 0x4be   :  { %3523 = vmatpush1.msk.msra.mxu0 %vm213_vm4, %v1834_v59  ;;  %3525 = vmatprep.subr.msk.mxu1 %vm213_vm4, %v1837_v34  ;;  %vm4731_vm11 = vmmov %vm4725_vm2  ;;  %v3549_v59 = vld [vmem:[%s4631_s4 + $0x1c] sm:$0xf] }
 0x4bf   :  { %v1841_v61 = vpop.permute.xlu0 %1840  ;;  %3524 = vmatmul.mubr.msk.f32.vlgmr.msra.gmra.mrb[2].mxu0 %vm4725_vm2, %v1854_v24  ;;  %3526 = vmatpush1.msk.msra.mxu1 %vm213_vm4, %v1836_v60  ;;  %v1843_v35 = vpop.permute.xlu1 %1842  ;;  %vm4732_vm2 = vcmp.lt.s32.totalorder %v3790_v12, 16 }
 0x4c0   :  { %v1847_v63 = vsel %vm4726_vm1, %v1841_v61, %v1843_v35  ;;  %3527 = vmatmul.mubr.msk.f32.vlgmr.msra.gmra.mrb[2].mxu1 %vm4727_vm5, %v1854_v24  ;;  %2252 = vmatprep.mubr.f32.mxu0 %v3685_v5  ;;  %vm4733_vm1 = vmmov %vm4727_vm5 }
 0x4c1   :  { %v1851_v52 = vsel %vm4014_vm0, %v4267_v31, %v1847_v63  ;;  %2323 = vmatprep.mubr.f32.mxu1 %v3685_v5  ;;  %vm4734_vm5 = vmmov %vm4732_vm2 }
 0x4c2   :  { %3529 = vmatprep.subr.msk.mxu0 %vm213_vm4, %v1851_v52 }
 0x4c3   :  { %v1839_v6 = vpop.permute.xlu0 %1838  ;;  %v1845_v7 = vpop.permute.xlu1 %1844 }
 0x4c4   :  { %v1848_v55 = vsel %vm4728_vm6, %v1839_v6, %v1841_v61  ;;  %v1846_v49 = vsel %vm4729_vm3, %v1843_v35, %v1845_v7  ;;  %v1849_v8 = vsel %vm4730_vm10, %v1845_v7, %v1839_v6  ;;  %vm4735_vm6 = vmmov %vm4732_vm2 }
 0x4c5   :  { %v1850_v10 = vsel %vm4025_vm12, %v4281_v23, %v1848_v55  ;;  %v1852_v19 = vsel %vm4036_vm13, %v4296_v18, %v1846_v49  ;;  %v1853_v25 = vsel %vm4043_vm7, %v4301_v38, %v1849_v8  ;;  %vm4736_vm3 = vmmov %vm4732_vm2 }
 0x4c6   :  { %3530 = vmatpush1.msk.msra.mxu0 %vm213_vm4, %v1850_v10  ;;  %3532 = vmatprep.subr.msk.mxu1 %vm213_vm4, %v1853_v25  ;;  %vm4737_vm10 = vmmov %vm4733_vm1 }
 0x4c7   :  { %v2335_v26 = vpop.permute.xlu0 %2334  ;;  %3531 = vmatmul.mubr.msk.f32.vlgmr.msra.gmra.mrb[2].mxu0 %vm4731_vm11, %v3528_v56  ;;  %3533 = vmatpush1.msk.msra.mxu1 %vm213_vm4, %v1852_v19  ;;  %v2337_v30 = vpop.permute.xlu1 %2336  ;;  %vm4738_vm11 = vcmp.lt.s32.totalorder %v3790_v12, 112 }
 0x4c8   :  { %v2344_v31 = vsel %vm4732_vm2, %v2335_v26, %v2337_v30  ;;  %3534 = vmatmul.mubr.msk.f32.vlgmr.msra.gmra.mrb[2].mxu1 %vm4733_vm1, %v3528_v56  ;;  %2447 = vmatprep.mubr.f32.mxu0 %v3685_v5  ;;  %vm4739_vm2 = vmmov %vm4733_vm1 }
 0x4c9   :  { %v2347_v32 = vsel %vm3965_vm8, %v4246_v4, %v2344_v31  ;;  %2518 = vmatprep.mubr.f32.mxu1 %v3685_v5  ;;  %vm4740_vm1 = vmmov %vm4738_vm11 }
 0x4ca   :  { %3536 = vmatprep.subr.msk.mxu0 %vm213_vm4, %v2347_v32 }
 0x4cb   :  { %v2341_v11 = vpop.permute.xlu0 %2340  ;;  %v2339_v33 = vpop.permute.xlu1 %2338 }
 0x4cc   :  { %v2345_v23 = vsel %vm4734_vm5, %v2341_v11, %v2335_v26  ;;  %v2342_v3 = vsel %vm4735_vm6, %v2339_v33, %v2341_v11  ;;  %v2343_v36 = vsel %vm4736_vm3, %v2337_v30, %v2339_v33  ;;  %vm4741_vm5 = vmmov %vm4740_vm1 }
 0x4cd   :  { %v2346_v18 = vsel %vm3974_vm14, %v4238_v16, %v2345_v23  ;;  %v2348_v38 = vsel %vm3984_vm9, %v4240_v17, %v2343_v36  ;;  %v2349_v27 = vsel %vm3991_vm15, %v4250_v22, %v2342_v3  ;;  %vm4742_vm6 = vmmov %vm4740_vm1 }
 0x4ce   :  { %3537 = vmatpush1.msk.msra.mxu0 %vm213_vm4, %v2346_v18  ;;  %3539 = vmatprep.subr.msk.mxu1 %vm213_vm4, %v2349_v27  ;;  %vm4743_vm3 = vmmov %vm4739_vm2 }
 0x4cf   :  { %v2353_v28 = vpop.permute.xlu0 %2352  ;;  %3538 = vmatmul.mubr.msk.f32.vlgmr.msra.gmra.mrb[2].mxu0 %vm4737_vm10, %v3535_v9  ;;  %3540 = vmatpush1.msk.msra.mxu1 %vm213_vm4, %v2348_v38  ;;  %v2355_v0 = vpop.permute.xlu1 %2354  ;;  %vm4744_vm10 = vcmp.lt.s32.totalorder %v3790_v12, 16  ;;  %v3570_v12 = vld [vmem:[%s4631_s4 + $0x20] sm:$0xf] }
 0x4d0   :  { %3543 = vmatprep.subr.msk.mxu0 %vm213_vm4, %v4246_v4  ;;  %v2359_v39 = vsel %vm4738_vm11, %v2353_v28, %v2355_v0  ;;  %3541 = vmatmul.mubr.msk.f32.vlgmr.msra.gmra.mrb[2].mxu1 %vm4739_vm2, %v3535_v9  ;;  %vm4745_vm11 = vmmov %vm4739_vm2 }
 0x4d1   :  { %3544 = vmatpush1.msk.msra.mxu0 %vm213_vm4, %v4238_v16  ;;  %3546 = vmatprep.subr.msk.mxu1 %vm213_vm4, %v4250_v22  ;;  %v2363_v40 = vsel %vm4014_vm0, %v4246_v4, %v2359_v39  ;;  %v3542_v4 = vld [vmem:[%s4631_s4 + $0x10] sm:$0xf]  ;;  %vm4746_vm2 = vmmov %vm4744_vm10 }
 0x4d2   :  { %3547 = vmatpush1.msk.msra.mxu1 %vm213_vm4, %v4240_v17  ;;  %3550 = vmatprep.subr.msk.mxu0 %vm213_vm4, %v2363_v40 }
 0x4d3   :  { %v2351_v2 = vpop.permute.xlu0 %2350  ;;  %v2357_v14 = vpop.permute.xlu1 %2356  ;;  %2610 = vmatprep.mubr.f32.mxu0 %v3685_v5  ;;  %2681 = vmatprep.mubr.f32.mxu1 %v3685_v5 }
 0x4d4   :  { %v2360_v15 = vsel %vm4740_vm1, %v2351_v2, %v2353_v28  ;;  %v2361_v51 = vsel %vm4741_vm5, %v2357_v14, %v2351_v2  ;;  %v2358_v45 = vsel %vm4742_vm6, %v2355_v0, %v2357_v14  ;;  %vm4747_vm1 = vmmov %vm4746_vm2  ;;  %v3417_v14 = vld [vmem:[%s4635_s8] sm:$0xf]  ;;  %s3688_s8 = smov [#allocation3]  }
 0x4d5   :  { %v2362_v54 = vsel %vm4025_vm12, %v4238_v16, %v2360_v15  ;;  %v2365_v29 = vsel %vm4043_vm7, %v4250_v22, %v2361_v51  ;;  %v2364_v53 = vsel %vm4036_vm13, %v4240_v17, %v2358_v45  ;;  %vm4749_vm5 = vmmov %vm4743_vm3  ;;  %s3445_s24 = sshll.u32 %s3688_s8, 4  ;;  %s3446_s24 = int_to_ptr.vmem [resolvable:$true] %s3445_s24 }
 0x4d6   :  { %3553 = vmatprep.subr.msk.mxu1 %vm213_vm4, %v2365_v29  ;;  %s3658_s27 = scalar_lea.vmem %s3446_s24, 256  ;;  %p3663_p1 = scmp.lt.s32.totalorder %s3446_s24, %s3446_s24 }
 0x4d7   :  { %v2856_v48 = vpop.permute.xlu0 %2855  ;;  %3545 = vmatmul.mubr.msk.f32.vlgmr.msra.gmra.mrb[2].mxu0 %vm4743_vm3, %v3542_v4  ;;  %v2858_v50 = vpop.permute.xlu1 %2857  ;;  %p3659_p0 = scmp.ne.s32.totalorder %s3446_s24, %s3658_s27  ;;  %p3664_p2 = scmp.lt.s32.totalorder %s3658_s27, %s3658_s27 }
 0x4d8   :  { %3551 = vmatpush1.msk.msra.mxu0 %vm213_vm4, %v2362_v54  ;;  %v2865_v16 = vsel %vm4744_vm10, %v2856_v48, %v2858_v50  ;;  %3548 = vmatmul.mubr.msk.f32.vlgmr.msra.gmra.mrb[2].mxu1 %vm4745_vm11, %v3542_v4  ;;  %vm4757_vm11 = vmmov %vm4743_vm3  ;;  %v3404_v54 = vld [vmem:[%s4634_s7] sm:$0xf] }
 0x4d9   :  { %3554 = vmatpush1.msk.msra.mxu1 %vm213_vm4, %v2364_v53  ;;  %v2868_v22 = vsel %vm3965_vm8, %v4349_v42, %v2865_v16  ;;  %2773 = vmatprep.mubr.f32.mxu0 %v3685_v5  ;;  %vm4748_vm8 = vmmov %vm4747_vm1  ;;  %p3665_p3 = por %p3664_p2, %p3663_p1 }
 0x4da   :  { %3557 = vmatprep.subr.msk.mxu0 %vm213_vm4, %v2868_v22  ;;  %2844 = vmatprep.mubr.f32.mxu1 %v3685_v5 }
 0x4db   :  { %v2862_v17 = vpop.permute.xlu0 %2861  ;;  %v2860_v57 = vpop.permute.xlu1 %2859  ;;  %p3666_p4 = pnand %p3665_p3, %p3659_p0 }
 0x4dc   :  { %v2866_v58 = vsel %vm4746_vm2, %v2862_v17, %v2856_v48  ;;  %v2863_v24 = vsel %vm4747_vm1, %v2860_v57, %v2862_v17  ;;  %v2864_v60 = vsel %vm4748_vm8, %v2858_v50, %v2860_v57  ;;  %vm4759_vm2 = vmmov %vm4743_vm3 }
 0x4dd   :  { %v2867_v62 = vsel %vm3974_vm14, %v4344_v1, %v2866_v58  ;;  %v2870_v34 = vsel %vm3991_vm15, %v4367_v47, %v2863_v24  ;;  %v2869_v63 = vsel %vm3984_vm9, %v4362_v43, %v2864_v60  ;;  %vm4750_vm14 = vmmov %vm4743_vm3 }
 0x4de   :  { %3560 = vmatprep.subr.msk.mxu1 %vm213_vm4, %v2870_v34  ;;  %vm4751_vm9 = vmmov %vm4742_vm6  ;;  %v3656_v34 = vld [vmem:[%s4629_s2] sm:$0xff] }
 0x4df   :  { %v2874_v61 = vpop.permute.xlu0 %2873  ;;  %3552 = vmatmul.mubr.msk.f32.vlgmr.msra.gmra.mrb[2].mxu0 %vm4749_vm5, %v3549_v59  ;;  %v2876_v35 = vpop.permute.xlu1 %2875  ;;  %vm4752_vm15 = vmmov %vm4742_vm6 }
 0x4e0   :  { %3558 = vmatpush1.msk.msra.mxu0 %vm213_vm4, %v2867_v62  ;;  %3555 = vmatmul.mubr.msk.f32.vlgmr.msra.gmra.mrb[2].mxu1 %vm4750_vm14, %v3549_v59  ;;  %v2880_v52 = vsel %vm4751_vm9, %v2874_v61, %v2876_v35  ;;  %vm4753_vm6 = vmmov %vm4743_vm3 }
 0x4e1   :  { %3561 = vmatpush1.msk.msra.mxu1 %vm213_vm4, %v2869_v63  ;;  %3564 = vmatprep.subr.msk.mxu0 %vm213_vm4, %v4349_v42  ;;  %v2884_v7 = vsel %vm4014_vm0, %v4349_v42, %v2880_v52  ;;  %vm4754_vm10 = vmmov %vm4751_vm9 }
 0x4e2   :  { %3567 = vmatprep.subr.msk.mxu1 %vm213_vm4, %v4367_v47  ;;  %2968 = vmatprep.mubr.f32.mxu0 %v3685_v5  ;;  %vm4755_vm0 = vmmov %vm4751_vm9 }
 0x4e3   :  { %v2872_v13 = vpop.permute.xlu0 %2871  ;;  %v2878_v21 = vpop.permute.xlu1 %2877  ;;  %3039 = vmatprep.mubr.f32.mxu1 %v3685_v5 }
 0x4e4   :  { %v2882_v6 = vsel %vm4752_vm15, %v2878_v21, %v2872_v13  ;;  %v2881_v49 = vsel %vm4754_vm10, %v2872_v13, %v2874_v61  ;;  %v2879_v42 = vsel %vm4755_vm0, %v2876_v35, %v2878_v21  ;;  %v3657_v35 = vld [vmem:[%s4629_s2 + $0x8] sm:$0xff] }
 0x4e5   :  { %v2886_v55 = vsel %vm4043_vm7, %v4367_v47, %v2882_v6  ;;  %v2883_v46 = vsel %vm4025_vm12, %v4344_v1, %v2881_v49  ;;  %vm4756_vm7 = vmmov %vm4743_vm3  ;;  %v2885_v47 = vsel %vm4036_vm13, %v4362_v43, %v2879_v42 }
 0x4e6   :  { %vm4758_vm12 = vmmov %vm4743_vm3 }
 0x4e7   :  { %3559 = vmatmul.mubr.msk.f32.vlgmr.msra.gmra.mrb[2].mxu0 %vm4753_vm6, %v3556_v20 }
 0x4e8   :  { %3565 = vmatpush1.msk.msra.mxu0 %vm213_vm4, %v4344_v1  ;;  %3562 = vmatmul.mubr.msk.f32.vlgmr.msra.gmra.mrb[2].mxu1 %vm4743_vm3, %v3556_v20 }
 0x4e9   :  { %3568 = vmatpush1.msk.msra.mxu1 %vm213_vm4, %v4362_v43  ;;  %3571 = vmatprep.subr.msk.mxu0 %vm213_vm4, %v2884_v7 }
 0x4ea   :  { %3574 = vmatprep.subr.msk.mxu1 %vm213_vm4, %v2886_v55  ;;  %3131 = vmatprep.mubr.f32.mxu0 %v3685_v5 }
 0x4eb   :  { %3202 = vmatprep.mubr.f32.mxu1 %v3685_v5 }
 0x4ef   :  { %3566 = vmatmul.mubr.msk.f32.vlgmr.msra.gmra.mrb[2].mxu0 %vm4756_vm7, %v3563_v37 }
 0x4f0   :  { %3572 = vmatpush1.msk.msra.mxu0 %vm213_vm4, %v2883_v46  ;;  %3569 = vmatmul.mubr.msk.f32.vlgmr.msra.gmra.mrb[2].mxu1 %vm4757_vm11, %v3563_v37 }
 0x4f1   :  { %3575 = vmatpush1.msk.msra.mxu1 %vm213_vm4, %v2885_v47  ;;  %3294 = vmatprep.mubr.f32.mxu0 %v3685_v5 }
 0x4f2   :  { %3365 = vmatprep.mubr.f32.mxu1 %v3685_v5 }
 0x4f7   :  { %3573 = vmatmul.mubr.msk.f32.vlgmr.msra.gmra.mrb[2].mxu0 %vm4758_vm12, %v3570_v12 }
 0x4f8   :  { %3576 = vmatmul.mubr.msk.f32.vlgmr.msra.gmra.mrb[2].mxu1 %vm4759_vm2, %v3570_v12 }
 0x5ca   :  { %v3296_v41 = vpop.f32.mrb[2].mxu0 }
 0x5cb   :  { %v3376_v44 = vsel %vm213_vm4, %v3296_v41, 0.0  ;;  %v3298_v1 = vpop.f32.mrb[3].mxu0  ;;  %v3367_v43 = vpop.f32.mrb[2].mxu1 }
 0x5cc   :  { %v3377_v8 = vsel %vm213_vm4, %v3298_v1, 0.0  ;;  %v3369_v56 = vpop.f32.mrb[3].mxu1  ;;  %v3379_v19 = vsel %vm213_vm4, %v3367_v43, 0.0 }
 0x5cd   :  { %v3378_v10 = vadd.f32 %v3377_v8, %v3376_v44  ;;  %v3381_v25 = vsel %vm213_vm4, %v3369_v56, 0.0 }
 0x5cf   :  { %v3380_v5 = vadd.f32 %v3379_v19, %v3378_v10 }
 0x5d1   :  { %v3382_v26 = vadd.f32 %v3381_v25, %v3380_v5 }
 0x5d3   :  { %3383 = vadd.xlane.f32.xlu0 %v3382_v26 }
 0x660   :  { %v3384_v30 = vpop.xlane.xlu0 %3383 }
 0x661   :  { %v3385_v31 = vmul.f32 0.001953125, %v3384_v30 }
 0x663   :  { %v3386_v32 = vsub.f32 %v3296_v41, %v3385_v31  ;;  %v3387_v11 = vsub.f32 %v3298_v1, %v3385_v31  ;;  %v3388_v33 = vsub.f32 %v3367_v43, %v3385_v31  ;;  %v3389_v23 = vsub.f32 %v3369_v56, %v3385_v31 }
 0x665   :  { %v3390_v3 = vmul.f32 %v3386_v32, %v3386_v32  ;;  %v3391_v36 = vmul.f32 %v3387_v11, %v3387_v11  ;;  %v3392_v9 = vmul.f32 %v3388_v33, %v3388_v33  ;;  %v3393_v18 = vmul.f32 %v3389_v23, %v3389_v23 }
 0x667   :  { %v3394_v38 = vsel %vm213_vm4, %v3390_v3, 0.0  ;;  %v3395_v27 = vsel %vm213_vm4, %v3391_v36, 0.0  ;;  %v3397_v0 = vsel %vm213_vm4, %v3392_v9, 0.0  ;;  %v3399_v40 = vsel %vm213_vm4, %v3393_v18, 0.0 }
 0x668   :  { %v3396_v28 = vadd.f32 %v3395_v27, %v3394_v38 }
 0x66a   :  { %v3398_v39 = vadd.f32 %v3397_v0, %v3396_v28 }
 0x66c   :  { %v3400_v2 = vadd.f32 %v3399_v40, %v3398_v39 }
 0x66e   :  { %3401 = vadd.xlane.f32.xlu1 %v3400_v2 }
 0x67f   :  { %3420 = vperm.xlu1 %3649, %v3417_v14  }
 0x6fb   :  { %v3402_v15 = vpop.xlane.xlu1 %3401 }
 0x6fc   :  { %v3403_v51 = vmul.f32 0.001953125, %v3402_v15 }
 0x6fe   :  { %v3405_v4 = vadd.f32 1e-05, %v3403_v51 }
 0x6ff   :  { %v3421_v17 = vpop.permute.xlu1 %3420 }
 0x700   :  { %3654 = vrsqrt.f32 %v3405_v4 }
 0x70a   :  { %v3655_v45 = vpop.eup %3654 }
 0x70b   :  { %v3407_v29 = vmul.f32 %v3655_v45, %v3404_v54 }
 0x70d   :  { %3410 = vperm.xlu0 %3648, %v3407_v29  }
 0x78c   :  { %v3411_v48 = vpop.permute.xlu0 %3410 }
 0x78d   :  { %v3413_v50 = vmul.f32 %v3411_v48, %v3386_v32  ;;  %v3414_v53 = vmul.f32 %v3411_v48, %v3387_v11  ;;  %v3415_v16 = vmul.f32 %v3411_v48, %v3388_v33  ;;  %v3416_v22 = vmul.f32 %v3411_v48, %v3389_v23 }
 0x78f   :  { %v3423_v57 = vadd.f32 %v3421_v17, %v3413_v50  ;;  %v3424_v58 = vadd.f32 %v3421_v17, %v3414_v53  ;;  %v3425_v24 = vadd.f32 %v3421_v17, %v3415_v16  ;;  %v3426_v59 = vadd.f32 %v3421_v17, %v3416_v22 }
 0x791   :  { %v3431_v62 = vcombine.low %v3423_v57, %v3424_v58  ;;  %v3432_v60 = vcombine.low %v3425_v24, %v3426_v59 }
 0x793   :  { %v3435_v61 = vadd.f32 %v3656_v34, %v3431_v62  ;;  %v3436_v63 = vadd.f32 %v3657_v35, %v3432_v60 }
 0x795   :  { %3437 = vst [vmem:[#allocation3] sm:$0xff] %v3435_v61  ;;  %3438 = vst [vmem:[#allocation3 + $0x8] sm:$0xff] %v3436_v63 }
 0x796   :  { %3669 = shalt.err (!%p3666_p4)
}
 0x797   :  { %s3670_s9 = scalar_lea.hbm %s4637_s10, 256 }
 0x798   :  { %p3671_p5 = scmp.ne.s32.totalorder %s4637_s10, %s3670_s9  ;;  %p3674_p6 = scmp.lt.u32.totalorder %s3670_s9, %s4637_s10 }
 0x79a   :  { %p3676_p7 = pnand %p3674_p6, %p3671_p5 }
 0x79c   :  { %3679 = shalt.err (!%p3676_p7)
}
 0x79d   :  { %3448 = dma.vmem_to_hbm [thread:$0]  %s3446_s24, 256, %s4637_s10, [#allocation4]  }
 0x79e   :  { %3680 = dma.done.wait [#allocation4], 256  }
 0x79f   :  { %3681 = vsyncadd [#allocation4], 4294967040 }
 0x7a0   :  { %3452 = vsyncpa [#allocation4], 1 }

</bundles_post_ra>
